<compile_context>
chip_gen: v7x
topology: tpu7x:2x2x1
jax: 0.10.0
libtpu: 0.0.40
codegen_flags: <defaults>
</compile_context>

<pallas_src>
import jax
import jax.numpy as jnp
import numpy as np
from jax.experimental import pallas as pl
from jax.experimental.pallas import tpu as pltpu

_LANE = 128


def _round_up(n, m):
    return ((n + m - 1) // m) * m


def _vmem_limit_bytes():
    """Per-generation VMEM budget with headroom (half of capacity, <=64 MiB)."""
    try:
        cap = int(pltpu.get_tpu_info().vmem_capacity_bytes)
    except Exception:  # query unavailable -> conservative default
        cap = 64 * 1024 * 1024
    return int(min(64 * 1024 * 1024, cap // 2))


def _const_weight_spec(shape):
    """BlockSpec for a grid-constant weight: single-buffered (no VMEM dup)."""
    zeros = (0,) * len(shape)
    try:
        return pl.BlockSpec(shape, lambda *_: zeros,
                            pipeline_mode=pl.Buffered(1))
    except TypeError:  # older JAX without pipeline_mode support
        return pl.BlockSpec(shape, lambda *_: zeros)


def bottleneck_kernel(x_ref, halo_ref, w1_ref, w2_ref, w3_ref, o_ref, pad_ref):
    # x_ref   : (1, TH, W, Cin_p)    row tile of one image (compute dtype)
    # halo_ref: (1, 1, 2, W, Cin_p)  rows above / below the tile (zeros at edges)
    # w1_ref  : (Cin_p, Pp)          1x1 conv1 weight as a matmul
    # w2_ref  : (9*Pp, Pp)           3x3 conv2 weight, rows ordered (dy, dx, cin)
    # w3_ref  : (Pp, Cout_p)         1x1 conv3 weight as a matmul
    # o_ref   : (1, TH, W, Cout_p)   output row tile (original dtype)
    # pad_ref : (TH+2, W+2, Pp)      compute-dtype VMEM scratch: conv2 input slab
    _, TH, W, Cin_p = x_ref.shape
    Pp = w1_ref.shape[1]
    Cout_p = w3_ref.shape[1]
    cdt = w1_ref.dtype                                   # MXU input dtype

    x_c = x_ref[0]                                       # (TH, W, Cin_p)
    halo = halo_ref[0, 0]                                # (2, W, Cin_p)

    # ---- conv1: 1x1 conv == channel matmul (MXU) over TH+2 rows, then ReLU --
    x_full = jnp.concatenate([halo[0:1], x_c, halo[1:2]], axis=0)
    h1 = jnp.maximum(
        jnp.dot(x_full.reshape((TH + 2) * W, Cin_p), w1_ref[...],
                preferred_element_type=jnp.float32), 0.0)
    h1 = h1.reshape(TH + 2, W, Pp).astype(cdt)

    # ---- conv2 input slab: one full-ref store (zero W-columns concat once) --
    zcol = jnp.zeros((TH + 2, 1, Pp), cdt)
    pad_ref[...] = jnp.concatenate([zcol, h1, zcol], axis=1)   # (TH+2, W+2, Pp)

    # ---- conv2: 3x3, stride=1, pad=1 as ONE im2col matmul + ReLU ------------
    cols = [pad_ref[dy:dy + TH, dx:dx + W, :]
            for dy in range(3) for dx in range(3)]
    patches = jnp.concatenate(cols, axis=-1).reshape(TH * W, 9 * Pp)
    h2 = jnp.maximum(
        jnp.dot(patches, w2_ref[...], preferred_element_type=jnp.float32), 0.0)

    # ---- conv3: 1x1 conv == channel matmul ----------------------------------
    h3 = jnp.dot(h2.astype(cdt), w3_ref[...], preferred_element_type=jnp.float32)

    # ---- identity residual + ReLU -------------------------------------------
    out = jnp.maximum(h3 + x_c.reshape(TH * W, Cin_p).astype(jnp.float32), 0.0)
    o_ref[0] = out.reshape(TH, W, Cout_p).astype(o_ref.dtype)


def bottleneck_pallas(x_nchw, w1, w2, w3, *, compute_dtype=jnp.bfloat16,
                      row_block=8):
    """Bottleneck forward (stride=1, identity residual).

    x_nchw: (N, Cin, H, W)  PyTorch layout
    w1    : (Cin, P)        conv1 1x1 weight (torch weight[:, :, 0, 0].T)
    w2    : (3, 3, P, P)    conv2 3x3 weight, HWIO
    w3    : (P, Cout=4P)    conv3 1x1 weight
    """
    N, Cin, H, W = x_nchw.shape
    P = w1.shape[1]
    Cout = w3.shape[1]
    assert Cout == Cin, "identity residual requires inplanes == planes * 4"
    out_dtype = x_nchw.dtype

    th = row_block if (H % row_block == 0) else H      # H-tile (row block) size
    rb = H // th

    # Lane-align channel dims (zero padding is exact, see header).
    Cin_p = _round_up(Cin, _LANE)
    P_p = _round_up(P, _LANE)
    Cout_p = _round_up(Cout, _LANE)

    # NCHW -> NHWC, pad channels, cast to the (bf16) compute dtype.
    x_nhwc = jnp.transpose(x_nchw, (0, 2, 3, 1))
    x_p = jnp.pad(x_nhwc, ((0, 0), (0, 0), (0, 0), (0, Cin_p - Cin)))
    x_p = x_p.astype(compute_dtype)

    # Per-tile 1-row halo (row above / below each row tile; zero rows at the
    # image border) as a small extra input -> plain Blocked BlockSpecs.
    xz = jnp.pad(x_p, ((0, 0), (1, 1), (0, 0), (0, 0)))     # (N, H+2, W, Cin_p)
    top = xz[:, 0:H:th]                                      # row r*th - 1
    bot = xz[:, th + 1:H + 2:th]                             # row r*th + th
    x_halo = jnp.stack([top, bot], axis=2)                   # (N, rb, 2, W, Cin_p)

    w1_p = jnp.pad(w1, ((0, Cin_p - Cin), (0, P_p - P))).astype(compute_dtype)
    w2_p = jnp.pad(w2, ((0, 0), (0, 0), (0, P_p - P), (0, P_p - P)))
    w2_p = w2_p.reshape(9 * P_p, P_p).astype(compute_dtype)  # rows = (dy,dx,cin)
    w3_p = jnp.pad(w3, ((0, P_p - P), (0, Cout_p - Cout))).astype(compute_dtype)

    itemsize = jnp.dtype(compute_dtype).itemsize
    flops = 2 * N * rb * ((th + 2) * W * Cin_p * P_p
                          + th * W * 9 * P_p * P_p
                          + th * W * P_p * Cout_p)
    bytes_accessed = ((x_p.size + x_halo.size + w1_p.size + w2_p.size
                       + w3_p.size) * itemsize
                      + N * H * W * Cout_p * jnp.dtype(out_dtype).itemsize)

    out_nhwc = pl.pallas_call(
        bottleneck_kernel,
        out_shape=jax.ShapeDtypeStruct((N, H, W, Cout_p), out_dtype),
        grid_spec=pltpu.PrefetchScalarGridSpec(
            num_scalar_prefetch=0,
            grid=(N, rb),
            in_specs=[
                pl.BlockSpec((1, th, W, Cin_p), lambda n, r: (n, r, 0, 0)),
                pl.BlockSpec((1, 1, 2, W, Cin_p), lambda n, r: (n, r, 0, 0, 0)),
                _const_weight_spec((Cin_p, P_p)),
                _const_weight_spec((9 * P_p, P_p)),
                _const_weight_spec((P_p, Cout_p)),
            ],
            out_specs=pl.BlockSpec((1, th, W, Cout_p), lambda n, r: (n, r, 0, 0)),
            scratch_shapes=[pltpu.VMEM((th + 2, W + 2, P_p), compute_dtype)],
        ),
        compiler_params=pltpu.CompilerParams(
            dimension_semantics=("parallel", "parallel"),
            vmem_limit_bytes=_vmem_limit_bytes(),
        ),
        cost_estimate=pl.CostEstimate(
            flops=int(flops), transcendentals=0,
            bytes_accessed=int(bytes_accessed)),
    )(x_p, x_halo, w1_p, w2_p, w3_p)

    out = out_nhwc[..., :Cout]                 # drop channel padding
    return jnp.transpose(out, (0, 3, 1, 2))    # NHWC -> NCHW


def bottleneck_reference(x_nchw, w1, w2, w3, compute_dtype=jnp.float32):
    """Pure-JAX reference (lax convs).  With compute_dtype=bf16 it emulates the
    kernel's bf16-input / f32-accumulate / bf16-intermediate numerics."""
    cdt = compute_dtype
    dn = ("NHWC", "HWIO", "NHWC")

    def conv(a, w, pad):
        return jax.lax.conv_general_dilated(
            a.astype(cdt), w.astype(cdt), (1, 1), pad, dimension_numbers=dn,
            preferred_element_type=jnp.float32)

    x = jnp.transpose(x_nchw, (0, 2, 3, 1)).astype(cdt)
    h1 = jax.nn.relu(conv(x, w1.reshape(1, 1, *w1.shape), "VALID")).astype(cdt)
    h2 = jax.nn.relu(conv(h1, w2, "SAME")).astype(cdt)
    h3 = conv(h2, w3.reshape(1, 1, *w3.shape), "VALID")
    out = jax.nn.relu(h3 + x.astype(jnp.float32))
    return jnp.transpose(out, (0, 3, 1, 2)).astype(x_nchw.dtype)


if __name__ == "__main__":
    # Small config consistent with the module: planes=4, inplanes=planes*4=16,
    # stride=1, downsample=None (identity residual).  NOTE: at these tiny
    # channel counts the 128-lane padding dominates the work; real ResNet
    # widths (>=64 channels) make the padding ~free.
    N, planes = 2, 4
    inplanes = planes * 4          # 16
    H = W = 16

    key = jax.random.PRNGKey(0)
    kx, k1, k2, k3 = jax.random.split(key, 4)

    x = jax.random.normal(kx, (N, inplanes, H, W), dtype=jnp.float32)

    # Weight shapes from __init__ (convs are bias-free; no BN in this module):
    #   conv1: (planes, inplanes, 1, 1) -> stored as (inplanes, planes)
    #   conv2: (planes, planes, 3, 3)   -> stored HWIO (3, 3, planes, planes)
    #   conv3: (4*planes, planes, 1, 1) -> stored as (planes, 4*planes)
    w1 = jax.random.normal(k1, (inplanes, planes), dtype=jnp.float32) \
        * (1.0 / np.sqrt(inplanes))
    w2 = jax.random.normal(k2, (3, 3, planes, planes), dtype=jnp.float32) \
        * (1.0 / np.sqrt(9 * planes))
    w3 = jax.random.normal(k3, (planes, 4 * planes), dtype=jnp.float32) \
        * (1.0 / np.sqrt(planes))

    # Exactness check: f32 compute path vs f32 lax-conv reference.
    ref_f32 = jax.block_until_ready(
        bottleneck_reference(x, w1, w2, w3, compute_dtype=jnp.float32))
    out_f32 = jax.block_until_ready(
        bottleneck_pallas(x, w1, w2, w3, compute_dtype=jnp.float32))
    np.testing.assert_allclose(np.asarray(out_f32), np.asarray(ref_f32),
                               rtol=1e-4, atol=1e-4)

    # Perf path: bf16 inputs/weights/intermediates with f32 accumulation,
    # checked against a bf16-emulated reference (not a loosened f32 check).
    ref_bf16 = jax.block_until_ready(
        bottleneck_reference(x, w1, w2, w3, compute_dtype=jnp.bfloat16))
    out_bf16 = jax.block_until_ready(
        bottleneck_pallas(x, w1, w2, w3, compute_dtype=jnp.bfloat16))
    np.testing.assert_allclose(np.asarray(out_bf16), np.asarray(ref_bf16),
                               rtol=1e-2, atol=1e-2)

    print("KERNEL_OK")
</pallas_src>

<mosaic_0001>
module attributes {stable_mosaic.version = 11 : i64} {
  func.func @bottleneck_kernel(%arg0: i32, %arg1: i32, %arg2: memref<1x8x16x128xf32, #tpu.memory_space<vmem>>, %arg3: memref<1x1x2x16x128xf32, #tpu.memory_space<vmem>>, %arg4: memref<128x128xf32, #tpu.memory_space<vmem>>, %arg5: memref<1152x128xf32, #tpu.memory_space<vmem>>, %arg6: memref<128x128xf32, #tpu.memory_space<vmem>>, %arg7: memref<1x8x16x128xf32, #tpu.memory_space<vmem>>, %arg8: memref<10x18x128xf32, #tpu.memory_space<vmem>>) attributes {dimension_semantics = [#tpu.dimension_semantics<parallel>, #tpu.dimension_semantics<parallel>], iteration_bounds = array<i64: 2, 2>, scalar_prefetch = 0 : i64, scratch_operands = 1 : i64, tpu.core_type = #tpu.core_type<tc>, window_params = [{transform_indices = @transform_0, window_bounds = array<i64: 1, 8, 16, 128>}, {transform_indices = @transform_1, window_bounds = array<i64: 1, 1, 2, 16, 128>}, {pipeline_mode = #tpu.pipeline_mode<synchronous>, transform_indices = @transform_2, window_bounds = array<i64: 128, 128>}, {pipeline_mode = #tpu.pipeline_mode<synchronous>, transform_indices = @transform_3, window_bounds = array<i64: 1152, 128>}, {pipeline_mode = #tpu.pipeline_mode<synchronous>, transform_indices = @transform_4, window_bounds = array<i64: 128, 128>}, {transform_indices = @transform_5, window_bounds = array<i64: 1, 8, 16, 128>}]} {
    %c0 = arith.constant 0 : index
    %c0_0 = arith.constant 0 : index
    %c0_1 = arith.constant 0 : index
    %c0_2 = arith.constant 0 : index
    %0 = vector.load %arg2[%c0, %c0_0, %c0_1, %c0_2] : memref<1x8x16x128xf32, #tpu.memory_space<vmem>>, vector<1x8x16x128xf32>
    %1 = vector.shape_cast %0 : vector<1x8x16x128xf32> to vector<8x16x128xf32>
    %c0_3 = arith.constant 0 : index
    %c0_4 = arith.constant 0 : index
    %c0_5 = arith.constant 0 : index
    %c0_6 = arith.constant 0 : index
    %c0_7 = arith.constant 0 : index
    %2 = vector.load %arg3[%c0_3, %c0_4, %c0_5, %c0_6, %c0_7] : memref<1x1x2x16x128xf32, #tpu.memory_space<vmem>>, vector<1x1x2x16x128xf32>
    %3 = vector.shape_cast %2 : vector<1x1x2x16x128xf32> to vector<2x16x128xf32>
    %4 = vector.extract_strided_slice %3 {offsets = [0, 0, 0], sizes = [1, 16, 128], strides = [1, 1, 1]} : vector<2x16x128xf32> to vector<1x16x128xf32>
    %5 = vector.extract_strided_slice %3 {offsets = [1, 0, 0], sizes = [1, 16, 128], strides = [1, 1, 1]} : vector<2x16x128xf32> to vector<1x16x128xf32>
    %6 = tpu.concatenate %4, %1, %5 in 0 : vector<1x16x128xf32>, vector<8x16x128xf32>, vector<1x16x128xf32> -> vector<10x16x128xf32>
    %7 = vector.shape_cast %6 : vector<10x16x128xf32> to vector<160x128xf32>
    %c0_8 = arith.constant 0 : index
    %c0_9 = arith.constant 0 : index
    %8 = vector.load %arg4[%c0_8, %c0_9] : memref<128x128xf32, #tpu.memory_space<vmem>>, vector<128x128xf32>
    %cst = arith.constant dense<0.000000e+00> : vector<160x128xf32>
    %9 = tpu.matmul %7, %8, %cst {dimension_numbers = #tpu.dot_dimension_numbers<[1], [0], [0], [1], [0, 0, 1, 1], [], []>} : vector<160x128xf32>, vector<128x128xf32>, vector<160x128xf32> -> vector<160x128xf32>
    %cst_10 = arith.constant 0.000000e+00 : f32
    %10 = vector.broadcast %cst_10 : f32 to vector<160x128xf32>
    %11 = arith.maximumf %9, %10 : vector<160x128xf32>
    %12 = vector.shape_cast %11 : vector<160x128xf32> to vector<10x16x128xf32>
    %cst_11 = arith.constant 0.000000e+00 : f32
    %13 = vector.broadcast %cst_11 : f32 to vector<10x1x128xf32>
    %14 = tpu.concatenate %13, %12, %13 in 1 : vector<10x1x128xf32>, vector<10x16x128xf32>, vector<10x1x128xf32> -> vector<10x18x128xf32>
    %c0_12 = arith.constant 0 : index
    %c0_13 = arith.constant 0 : index
    %c0_14 = arith.constant 0 : index
    %15 = vector.load %arg8[%c0_12, %c0_13, %c0_14] : memref<10x18x128xf32, #tpu.memory_space<vmem>>, vector<10x18x128xf32>
    tpu.vector_store %arg8[%c0_12, %c0_13, %c0_14], %14 {strides = array<i32>} : memref<10x18x128xf32, #tpu.memory_space<vmem>>, vector<10x18x128xf32>,
    %c0_15 = arith.constant 0 : index
    %c0_16 = arith.constant 0 : index
    %c0_17 = arith.constant 0 : index
    %16 = vector.load %arg8[%c0_15, %c0_16, %c0_17] : memref<10x18x128xf32, #tpu.memory_space<vmem>>, vector<8x16x128xf32>
    %c0_18 = arith.constant 0 : index
    %c1 = arith.constant 1 : index
    %c0_19 = arith.constant 0 : index
    %17 = vector.load %arg8[%c0_18, %c1, %c0_19] : memref<10x18x128xf32, #tpu.memory_space<vmem>>, vector<8x16x128xf32>
    %c0_20 = arith.constant 0 : index
    %c2 = arith.constant 2 : index
    %c0_21 = arith.constant 0 : index
    %18 = vector.load %arg8[%c0_20, %c2, %c0_21] : memref<10x18x128xf32, #tpu.memory_space<vmem>>, vector<8x16x128xf32>
    %c1_22 = arith.constant 1 : index
    %c0_23 = arith.constant 0 : index
    %c0_24 = arith.constant 0 : index
    %19 = vector.load %arg8[%c1_22, %c0_23, %c0_24] : memref<10x18x128xf32, #tpu.memory_space<vmem>>, vector<8x16x128xf32>
    %c1_25 = arith.constant 1 : index
    %c1_26 = arith.constant 1 : index
    %c0_27 = arith.constant 0 : index
    %20 = vector.load %arg8[%c1_25, %c1_26, %c0_27] : memref<10x18x128xf32, #tpu.memory_space<vmem>>, vector<8x16x128xf32>
    %c1_28 = arith.constant 1 : index
    %c2_29 = arith.constant 2 : index
    %c0_30 = arith.constant 0 : index
    %21 = vector.load %arg8[%c1_28, %c2_29, %c0_30] : memref<10x18x128xf32, #tpu.memory_space<vmem>>, vector<8x16x128xf32>
    %c2_31 = arith.constant 2 : index
    %c0_32 = arith.constant 0 : index
    %c0_33 = arith.constant 0 : index
    %22 = vector.load %arg8[%c2_31, %c0_32, %c0_33] : memref<10x18x128xf32, #tpu.memory_space<vmem>>, vector<8x16x128xf32>
    %c2_34 = arith.constant 2 : index
    %c1_35 = arith.constant 1 : index
    %c0_36 = arith.constant 0 : index
    %23 = vector.load %arg8[%c2_34, %c1_35, %c0_36] : memref<10x18x128xf32, #tpu.memory_space<vmem>>, vector<8x16x128xf32>
    %c2_37 = arith.constant 2 : index
    %c2_38 = arith.constant 2 : index
    %c0_39 = arith.constant 0 : index
    %24 = vector.load %arg8[%c2_37, %c2_38, %c0_39] : memref<10x18x128xf32, #tpu.memory_space<vmem>>, vector<8x16x128xf32>
    %25 = tpu.concatenate %16, %17, %18, %19, %20, %21, %22, %23, %24 in 2 : vector<8x16x128xf32>, vector<8x16x128xf32>, vector<8x16x128xf32>, vector<8x16x128xf32>, vector<8x16x128xf32>, vector<8x16x128xf32>, vector<8x16x128xf32>, vector<8x16x128xf32>, vector<8x16x128xf32> -> vector<8x16x1152xf32>
    %26 = vector.shape_cast %25 : vector<8x16x1152xf32> to vector<128x1152xf32>
    %c0_40 = arith.constant 0 : index
    %c0_41 = arith.constant 0 : index
    %27 = vector.load %arg5[%c0_40, %c0_41] : memref<1152x128xf32, #tpu.memory_space<vmem>>, vector<1152x128xf32>
    %cst_42 = arith.constant dense<0.000000e+00> : vector<128x128xf32>
    %28 = tpu.matmul %26, %27, %cst_42 {dimension_numbers = #tpu.dot_dimension_numbers<[1], [0], [0], [1], [0, 0, 1, 1], [], []>} : vector<128x1152xf32>, vector<1152x128xf32>, vector<128x128xf32> -> vector<128x128xf32>
    %cst_43 = arith.constant 0.000000e+00 : f32
    %29 = vector.broadcast %cst_43 : f32 to vector<128x128xf32>
    %30 = arith.maximumf %28, %29 : vector<128x128xf32>
    %c0_44 = arith.constant 0 : index
    %c0_45 = arith.constant 0 : index
    %31 = vector.load %arg6[%c0_44, %c0_45] : memref<128x128xf32, #tpu.memory_space<vmem>>, vector<128x128xf32>
    %cst_46 = arith.constant dense<0.000000e+00> : vector<128x128xf32>
    %32 = tpu.matmul %30, %31, %cst_46 {dimension_numbers = #tpu.dot_dimension_numbers<[1], [0], [0], [1], [0, 0, 1, 1], [], []>} : vector<128x128xf32>, vector<128x128xf32>, vector<128x128xf32> -> vector<128x128xf32>
    %33 = vector.shape_cast %1 : vector<8x16x128xf32> to vector<128x128xf32>
    %34 = arith.addf %32, %33 : vector<128x128xf32>
    %cst_47 = arith.constant 0.000000e+00 : f32
    %35 = vector.broadcast %cst_47 : f32 to vector<128x128xf32>
    %36 = arith.maximumf %34, %35 : vector<128x128xf32>
    %37 = vector.shape_cast %36 : vector<128x128xf32> to vector<8x16x128xf32>
    %c0_48 = arith.constant 0 : index
    %c0_49 = arith.constant 0 : index
    %c0_50 = arith.constant 0 : index
    %c0_51 = arith.constant 0 : index
    %38 = vector.load %arg7[%c0_48, %c0_49, %c0_50, %c0_51] : memref<1x8x16x128xf32, #tpu.memory_space<vmem>>, vector<1x8x16x128xf32>
    %39 = vector.shape_cast %38 : vector<1x8x16x128xf32> to vector<8x16x128xf32>
    %40 = vector.shape_cast %37 : vector<8x16x128xf32> to vector<1x8x16x128xf32>
    tpu.vector_store %arg7[%c0_48, %c0_49, %c0_50, %c0_51], %40 {strides = array<i32>} : memref<1x8x16x128xf32, #tpu.memory_space<vmem>>, vector<1x8x16x128xf32>,
    return
  }
  func.func @transform_0(%arg0: i32, %arg1: i32) -> (i32, i32, i32, i32) {
    %c0_i32 = arith.constant 0 : i32
    %c0_i32_0 = arith.constant 0 : i32
    %c0_i32_1 = arith.constant 0 : i32
    return %arg0, %arg1, %c0_i32, %c0_i32_0 : i32, i32, i32, i32
  }
  func.func @transform_1(%arg0: i32, %arg1: i32) -> (i32, i32, i32, i32, i32) {
    %c0_i32 = arith.constant 0 : i32
    %c0_i32_0 = arith.constant 0 : i32
    %c0_i32_1 = arith.constant 0 : i32
    %c0_i32_2 = arith.constant 0 : i32
    return %arg0, %arg1, %c0_i32, %c0_i32_0, %c0_i32_1 : i32, i32, i32, i32, i32
  }
  func.func @transform_2(%arg0: i32, %arg1: i32) -> (i32, i32) {
    %c0_i32 = arith.constant 0 : i32
    %c0_i32_0 = arith.constant 0 : i32
    %c0_i32_1 = arith.constant 0 : i32
    return %c0_i32, %c0_i32_0 : i32, i32
  }
  func.func @transform_3(%arg0: i32, %arg1: i32) -> (i32, i32) {
    %c0_i32 = arith.constant 0 : i32
    %c0_i32_0 = arith.constant 0 : i32
    %c0_i32_1 = arith.constant 0 : i32
    return %c0_i32, %c0_i32_0 : i32, i32
  }
  func.func @transform_4(%arg0: i32, %arg1: i32) -> (i32, i32) {
    %c0_i32 = arith.constant 0 : i32
    %c0_i32_0 = arith.constant 0 : i32
    %c0_i32_1 = arith.constant 0 : i32
    return %c0_i32, %c0_i32_0 : i32, i32
  }
  func.func @transform_5(%arg0: i32, %arg1: i32) -> (i32, i32, i32, i32) {
    %c0_i32 = arith.constant 0 : i32
    %c0_i32_0 = arith.constant 0 : i32
    %c0_i32_1 = arith.constant 0 : i32
    return %arg0, %arg1, %c0_i32, %c0_i32_0 : i32, i32, i32, i32
  }
}

</mosaic_0001>

<bundles_post_ra>
// kernel: tpu_custom_call.1
= control target key start
LH: loop header
LB: loop body
LE: loop exit
PB: predicated region body
PF: predicated region fallthrough
CT: control target
= control target key end

     0   :  { %s4318_s0 = inlined_call_operand.hbm [shape: f32[2,16,16,128], index: 0, kind: input, shape index: {}]   ;;  %s4319_s1 = inlined_call_operand.hbm [shape: f32[2,2,2,16,128], index: 1, kind: input, shape index: {}]   ;;  %s4320_s2 = inlined_call_operand.hbm [shape: f32[128,128], index: 2, kind: input, shape index: {}]   ;;  %s4321_s3 = inlined_call_operand.hbm [shape: f32[1152,128], index: 3, kind: input, shape index: {}]   ;;  %s4322_s4 = inlined_call_operand.hbm [shape: f32[128,128], index: 4, kind: input, shape index: {}]   ;;  %s4323_s5 = inlined_call_operand.hbm [shape: f32[2,16,16,128], index: 5, kind: output, shape index: {}]  }
   0x1   :  { %4336 = sst [smem:[#allocation22_spill]] %s4318_s0 }
   0x2   :  { %4337 = sst [smem:[#allocation23_spill]] %s4320_s2 }
   0x3   :  { %4338 = sst [smem:[#allocation24_spill]] %s4321_s3 }
   0x4   :  { %4339 = sst [smem:[#allocation25_spill]] %s4322_s4 }
   0x5   :  { %4340 = sst [smem:[#allocation26_spill]] %s4323_s5 }
   0x6   :  { %10 = vsyncpa [#allocation4], 0 }
   0x7   :  { %12 = vsyncpa [#allocation4 + $0x1], 0 }
   0x8   :  { %13 = vsyncpa [#allocation7], 0 }
   0x9   :  { %15 = vsyncpa [#allocation7 + $0x1], 0 }
   0xa   :  { %16 = vsyncpa [#allocation10], 0 }
   0xb   :  { %17 = vsyncpa [#allocation5], 0 }
   0xc   :  { %19 = vsyncpa [#allocation5 + $0x1], 0  ;;  %s3424_s18 = smov 0   ;;  %s3426_s19 = smov 0  }
   0xd   :  { %s3428_s20 = smov 0   ;;  %s3430_s21 = smov 0  }
   0xe   :  { %s3432_s22 = smov 0   ;;  %s3434_s23 = smov 0  }
   0xf   :  { %s3436_s24 = smov 0   ;;  %s3438_s25 = smov 0  }
  0x10 LB: > { %4341 = sst [smem:[#allocation18_spill]] %s3354_s18  ;;  %s3465_s26 = sadd.s32 4294967295, %s3382_s25   ;;  %s3382_s25 = sphi %s3438_s25, %s25_s25   ;;  %s3378_s24 = sphi %s3436_s24, %s4381_s24   ;;  %s3374_s23 = sphi %s3434_s23, %s4380_s23   ;;  %s3370_s22 = sphi %s3432_s22, %s4379_s22   ;;  %s3366_s21 = sphi %s3430_s21, %s4378_s21   ;;  %s3362_s20 = sphi %s3428_s20, %s4377_s20   ;;  %s3358_s19 = sphi %s3426_s19, %s4376_s19   ;;  %s3354_s18 = sphi %s3424_s18, %s4375_s18  }
  0x11   : > { %s2089_s27 = sadd.s32 4294967294, %s3382_s25   ;;  %p59_p0 = scmp.ne.s32.totalorder %s3358_s19, %s3354_s18 }
  0x12   : > { %p4324_p1 = scmp.eq.s32.totalorder %s3465_s26, 0  ;;  %p182_p3 = scmp.eq.s32.totalorder %s2089_s27, 3 }
  0x13   : > { %p2090_p5 = scmp.ge.s32.totalorder %s3382_s25, 1  ;;  %p189_p7 = scmp.lt.s32.totalorder %s3382_s25, 5 }
  0x14   : > { %p3474_p4 = por %p4324_p1, %p59_p0  ;;  %p3479_p6 = por %p182_p3, %p59_p0 }
  0x15   : > { %p3484_p8 = pnand %p2090_p5, %p189_p7  ;;  %s3384_s6 = smov [#allocation8]  }
  0x16   : > { %s4342_s28 = scalar_select %p3474_p4, 1, 0 }
  0x17   : > { %s4343_s29 = scalar_select %p3479_p6, 1, 0 }
  0x18   : > { %s4345_s30 = scalar_select %p3484_p8, 1, 0 }
  0x19   : > { %4344 = sst [smem:[#allocation19_spill]] %s4343_s29  ;;  %s201_s7 = sshll.u32 %s3384_s6, 4  ;;  %s3488_s7 = int_to_ptr.vmem [resolvable:$true] %s201_s7 }
  0x1a   : > { %p2972_p9 = pneg %p3484_p8  ;;  %s3385_s9 = smov [#allocation9]  }
  0x1b   : > { %s214_s10 = sshll.u32 %s3385_s9, 4  ;;  %s3386_s11 = smov [#allocation11]   ;;  %s3498_s10 = int_to_ptr.vmem [resolvable:$true] %s214_s10 }
  0x1c   : > { %p3494_p10 = pnand %p2972_p9, %p4324_p1  ;;  %s3500_s12 = sshll.u32 %s3386_s11, 4  ;;  %s228_s12 = int_to_ptr.vmem [resolvable:$true] %s3500_s12 }
  0x1d   : > { %s4347_s2 = sld [smem:[#allocation23_spill]] }
  0x1e   : > { %p3510_p12 = pneg %p3494_p10 }
  0x23   : > { %s3128_s15 = scalar_lea.hbm %s4347_s2, 2048 }
  0x24   : > { %p3129_p11 = scmp.ne.s32.totalorder %s4347_s2, %s3128_s15  ;;  %p3135_p3 = scmp.lt.u32.totalorder %s3128_s15, %s4347_s2 }
  0x26   : > { %p3131_p13 = pnand %p3510_p12, %p3129_p11 }
  0x28   : > { %p3132_p0 = pneg %p3131_p13 }
  0x2a   : > { %p3137_p5 = pnand %p3135_p3, %p3132_p0 }
  0x2c   : > { %3140 = shalt.err (!%p3137_p5)
}
  0x2d   : > { %s3141_s11 = scalar_lea.vmem %s3488_s7, 2048  ;;  %p3149_p2 = scmp.lt.s32.totalorder %s3488_s7, %s3488_s7 }
  0x2e   : > { %p3142_p7 = scmp.ne.s32.totalorder %s3488_s7, %s3141_s11  ;;  %p3150_p6 = scmp.lt.s32.totalorder %s3141_s11, %s3141_s11 }
  0x30   : > { %p3144_p9 = pnand %p3142_p7, %p3510_p12  ;;  %p3151_p11 = por %p3150_p6, %p3149_p2 }
  0x32   : > { %p3145_p1 = pneg %p3144_p9 }
  0x34   : > { %p3152_p13 = pnand %p3151_p11, %p3145_p1 }
  0x36   : > { %3155 = shalt.err (!%p3152_p13)
}
  0x37   : > { %s4330_s13 = smov 128   ;;  %s4332_s14 = smov 8  }
  0x38   : > { %2975 = dma.hbm_to_vmem [thread:$0]  (!%p3494_p10), %s4347_s2, 2048, %s3488_s7, [#allocation7], %s4330_s13, %s4330_s13, %s4332_s14  }
  0x39   : > { %s4349_s3 = sld [smem:[#allocation24_spill]] }
  0x3f   : > { %s3156_s9 = scalar_lea.hbm %s4349_s3, 18432 }
  0x40   : > { %p3157_p1 = scmp.ne.s32.totalorder %s4349_s3, %s3156_s9  ;;  %p3163_p0 = scmp.lt.u32.totalorder %s3156_s9, %s4349_s3 }
  0x42   : > { %p3159_p2 = pnand %p3157_p1, %p3510_p12 }
  0x44   : > { %p3160_p6 = pneg %p3159_p2 }
  0x46   : > { %p3165_p3 = pnand %p3163_p0, %p3160_p6 }
  0x48   : > { %3168 = shalt.err (!%p3165_p3)
}
  0x49   : > { %s3169_s7 = scalar_lea.vmem %s3498_s10, 18432  ;;  %p3177_p11 = scmp.lt.s32.totalorder %s3498_s10, %s3498_s10 }
  0x4a   : > { %p3170_p5 = scmp.ne.s32.totalorder %s3498_s10, %s3169_s7  ;;  %p3178_p13 = scmp.lt.s32.totalorder %s3169_s7, %s3169_s7 }
  0x4c   : > { %p3172_p7 = pnand %p3170_p5, %p3510_p12  ;;  %p3179_p1 = por %p3178_p13, %p3177_p11 }
  0x4e   : > { %p3173_p9 = pneg %p3172_p7 }
  0x50   : > { %p3180_p2 = pnand %p3179_p1, %p3173_p9 }
  0x52   : > { %3183 = shalt.err (!%p3180_p2)
}
  0x53   : > { %2978 = dma.hbm_to_vmem [thread:$0]  (!%p3494_p10), %s4349_s3, 18432, %s3498_s10, [#allocation10], %s4330_s13, %s4330_s13, %s4332_s14  }
  0x54   : > { %s4350_s4 = sld [smem:[#allocation25_spill]] }
  0x5a   : > { %s3184_s16 = scalar_lea.hbm %s4350_s4, 2048 }
  0x5b   : > { %p3185_p6 = scmp.ne.s32.totalorder %s4350_s4, %s3184_s16  ;;  %p3191_p5 = scmp.lt.u32.totalorder %s3184_s16, %s4350_s4 }
  0x5d   : > { %p3187_p0 = pnand %p3185_p6, %p3510_p12 }
  0x5f   : > { %p3188_p3 = pneg %p3187_p0 }
  0x61   : > { %p3193_p7 = pnand %p3191_p5, %p3188_p3 }
  0x63   : > { %3196 = shalt.err (!%p3193_p7)
}
  0x64   : > { %s3197_s7 = scalar_lea.vmem %s228_s12, 2048  ;;  %p3205_p1 = scmp.lt.s32.totalorder %s228_s12, %s228_s12 }
  0x65   : > { %p3198_p9 = scmp.ne.s32.totalorder %s228_s12, %s3197_s7  ;;  %p3206_p2 = scmp.lt.s32.totalorder %s3197_s7, %s3197_s7 }
  0x67   : > { %p3200_p11 = pnand %p3198_p9, %p3510_p12  ;;  %p3207_p4 = por %p3206_p2, %p3205_p1 }
  0x69   : > { %p3201_p13 = pneg %p3200_p11 }
  0x6b   : > { %p3208_p8 = pnand %p3207_p4, %p3201_p13 }
  0x6d   : > { %3211 = shalt.err (!%p3208_p8)
}
  0x6e   : > { %2981 = dma.hbm_to_vmem [thread:$0]  (!%p3494_p10), %s4350_s4, 2048, %s228_s12, [#allocation10], %s4330_s13, %s4330_s13, %s4332_s14  }
  0x6f   : > { %s34_s8 = sadd.s32 1, %s3374_s23  ;;  %s37_s27 = sadd.s32 1, %s3378_s24 }
  0x70   : > { %p35_p4 = scmp.ge.s32.totalorder %s34_s8, 2  ;;  %s46_s18 = sadd.s32 1, %s3362_s20 }
  0x71   : > { %p53_p8 = scmp.ne.s32.totalorder %s3362_s20, %s3358_s19  ;;  %p54_p12 = scmp.eq.s32.totalorder %s3382_s25, 0 }
  0x72   : > { %s4383_s8 = smov (%p35_p4, %s34_s8), 0  ;;  %s4385_s27 = smov (!%p35_p4, %s37_s27), %s3378_s24 }
  0x73   : > { %4351 = sst [smem:[#allocation20_spill]] %s4383_s8  ;;  %s42_s29 = ssub.s32 %s3374_s23, %s4383_s8 }
  0x74   : > { %p39_p6 = scmp.ge.s32.totalorder %s4385_s27, 2  ;;  %p4352_p0 = scmp.eq.s32.totalorder %s3465_s26, 3 }
  0x75   : > { %p3599_p10 = por %p54_p12, %p53_p8  ;;  %p2996_p5 = scmp.lt.s32.totalorder %s3382_s25, 4 }
  0x76   : > { %p3595_p3 = por %p4352_p0, %p53_p8  ;;  %s4387_s27 = smov (%p39_p6, %s4385_s27), 0 }
  0x77   : > { %4355 = sst [smem:[#allocation21_spill]] %s4387_s27  ;;  %s3607_s16 = sand.u32 1, %s3362_s20  }
  0x78   : > { %s2118_s17 = sshll.u32 %s3374_s23, 4  ;;  %s41_s6 = ssub.s32 %s3378_s24, %s4387_s27 }
  0x79   : > { %s43_s9 = sor.u32 %s42_s29, %s41_s6  ;;  %s2095_s11 = sshll.u32 %s3607_s16, 7 }
  0x7a   : > { %p44_p7 = scmp.eq.s32.totalorder %s43_s9, 0  ;;  %s2098_s7 = sshll.u32 %s3378_s24, 5 }
  0x7b   : > { %s245_s10 = scalar_lea.vmem [#allocation3], %s2095_s11  ;;  %s252_s14 = sadd.s32 %s2118_s17, %s2098_s7 }
  0x7c   : > { %s255_s5 = sshll.u32 %s245_s10, 4  ;;  %s2099_s2 = sshll.u32 %s252_s14, 7  ;;  %s3617_s5 = int_to_ptr.vmem [resolvable:$true] %s255_s5 }
  0x7d   : > { %s3615_s13 = scalar_select %p44_p7, %s3362_s20, %s46_s18  }
  0x7e   : > { %p3623_p9 = pnand %p2996_p5, %p3599_p10  ;;  %s4357_s0 = sld [smem:[#allocation22_spill]] }
  0x7f   : > { %s242_s17 = scalar_lea.sflag [#allocation4], %s3607_s16 }
  0x80   : > { %p3214_p13 = pneg %p3623_p9 }
  0x84   : > { %s3630_s29 = scalar_lea.hbm %s4357_s0, %s2099_s2  ;;  %s3217_s27 = scalar_lea.hbm %s4357_s0, 8192 }
  0x85   : > { %s3212_s14 = scalar_lea.hbm %s3630_s29, 2048  ;;  %p3218_p4 = scmp.lt.u32.totalorder %s3630_s29, %s4357_s0 }
  0x86   : > { %p3213_p11 = scmp.ne.s32.totalorder %s3630_s29, %s3212_s14  ;;  %p3219_p8 = scmp.lt.u32.totalorder %s3217_s27, %s3212_s14 }
  0x87   : > { %p3221_p6 = scmp.lt.u32.totalorder %s3212_s14, %s3630_s29 }
  0x88   : > { %p3215_p1 = pnand %p3214_p13, %p3213_p11  ;;  %p3220_p12 = por %p3219_p8, %p3218_p4 }
  0x8a   : > { %p3216_p2 = pneg %p3215_p1  ;;  %p3222_p0 = por %p3221_p6, %p3220_p12 }
  0x8c   : > { %p3223_p10 = pnand %p3222_p0, %p3216_p2 }
  0x8e   : > { %3226 = shalt.err (!%p3223_p10)
}
  0x8f   : > { %s3227_s9 = scalar_lea.vmem %s3617_s5, 2048  ;;  %s3389_s11 = smov [#allocation3]  }
  0x90   : > { %p3228_p5 = scmp.ne.s32.totalorder %s3617_s5, %s3227_s9  ;;  %s3232_s7 = sshll.u32 %s3389_s11, 4  ;;  %s3233_s7 = int_to_ptr.vmem [resolvable:$false] %s3232_s7 }
  0x91   : > { %s3234_s10 = scalar_lea.vmem %s3233_s7, 4096  ;;  %p3235_p1 = scmp.lt.s32.totalorder %s3617_s5, %s3233_s7 }
  0x92   : > { %p3230_p7 = pnand %p3228_p5, %p3214_p13  ;;  %p3236_p4 = scmp.lt.s32.totalorder %s3234_s10, %s3227_s9 }
  0x94   : > { %p3231_p11 = pneg %p3230_p7  ;;  %p3237_p8 = por %p3236_p4, %p3235_p1 }
  0x96   : > { %p3238_p12 = pnand %p3237_p8, %p3231_p11 }
  0x98   : > { %3241 = shalt.err (!%p3238_p12)
}
  0x99   : > { %s4358_s14 = smov 8   ;;  %s4359_s12 = smov 128  }
  0x9a   : > { %2985 = dma.hbm_to_vmem [thread:$0]  (!%p3623_p9), %s3630_s29, 2048, %s3617_s5, %s242_s17, %s4359_s12, %s4359_s12, %s4358_s14  }
  0x9b   : > { %s2100_s4 = sshll.u32 %s3607_s16, 5  ;;  %s2101_s27 = sshll.u32 %s3374_s23, 2 }
  0x9c   : > { %s2102_s2 = sshll.u32 %s3378_s24, 3  ;;  %s269_s9 = scalar_lea.vmem [#allocation6], %s2100_s4 }
  0x9d   : > { %s275_s6 = sadd.s32 %s2102_s2, %s2101_s27  ;;  %s278_s11 = sshll.u32 %s269_s9, 4  ;;  %s3667_s11 = int_to_ptr.vmem [resolvable:$true] %s278_s11 }
  0x9e   : > { %s2103_s7 = sshll.u32 %s275_s6, 7  ;;  %s4360_s8 = sand.u32 1, %s3382_s25  }
  0x9f   : > { %s3672_s0 = scalar_lea.hbm %s4319_s1, %s2103_s7  ;;  %s3676_s5 = scalar_lea.sflag [#allocation7], %s4360_s8 }
  0xa0   : > { %s3242_s16 = scalar_lea.hbm %s3672_s0, 512  ;;  %s3247_s4 = scalar_lea.hbm %s4319_s1, 2048 }
  0xa1   : > { %p3243_p2 = scmp.ne.s32.totalorder %s3672_s0, %s3242_s16  ;;  %p3248_p10 = scmp.lt.u32.totalorder %s3672_s0, %s4319_s1 }
  0xa2   : > { %p3249_p5 = scmp.lt.u32.totalorder %s3247_s4, %s3242_s16  ;;  %p3251_p11 = scmp.lt.u32.totalorder %s3242_s16, %s3672_s0 }
  0xa3   : > { %p3245_p6 = pnand %p3243_p2, %p3214_p13 }
  0xa4   : > { %p3250_p7 = por %p3249_p5, %p3248_p10 }
  0xa5   : > { %p3246_p0 = pneg %p3245_p6 }
  0xa6   : > { %p3252_p1 = por %p3251_p11, %p3250_p7 }
  0xa8   : > { %p3253_p4 = pnand %p3252_p1, %p3246_p0 }
  0xaa   : > { %3256 = shalt.err (!%p3253_p4)
}
  0xab   : > { %s3257_s8 = scalar_lea.vmem %s3667_s11, 512  ;;  %s3390_s2 = smov [#allocation6]  }
  0xac   : > { %p3258_p8 = scmp.ne.s32.totalorder %s3667_s11, %s3257_s8  ;;  %s3262_s6 = sshll.u32 %s3390_s2, 4  ;;  %s3263_s6 = int_to_ptr.vmem [resolvable:$false] %s3262_s6 }
  0xad   : > { %s3264_s9 = scalar_lea.vmem %s3263_s6, 1024  ;;  %p3265_p6 = scmp.lt.s32.totalorder %s3667_s11, %s3263_s6 }
  0xae   : > { %p3260_p12 = pnand %p3258_p8, %p3214_p13  ;;  %p3266_p10 = scmp.lt.s32.totalorder %s3264_s9, %s3257_s8 }
  0xb0   : > { %p3261_p2 = pneg %p3260_p12  ;;  %p3267_p5 = por %p3266_p10, %p3265_p6 }
  0xb2   : > { %p3268_p7 = pnand %p3267_p5, %p3261_p2 }
  0xb4   : > { %3271 = shalt.err (!%p3268_p7)
}
  0xb5   : > { %2988 = dma.hbm_to_vmem [thread:$0]  (!%p3623_p9), %s3672_s0, 512, %s3667_s11, %s3676_s5, %s4359_s12, %s4359_s12, %s4358_s14  }
  0xb6   : > { %p4361_p13 = scmp.ne.s32.totalorder %s4345_s30, 0 }
  0xb7   : > { %s3708_s7 = sand.u32 (!%p4361_p13), 1, %s3358_s19   ;;  %p4362_p0 = scmp.ne.s32.totalorder (!%p4361_p13), %s4342_s28, 0 }
  0xb8   : > { %290 = sbr.rel (%p4361_p13) target bundleno = 1070 (0x42e), region = 40  ;;  %s2105_s10 = sshll.u32 (!%p4361_p13), %s3708_s7, 7 }
  0xb9   : > { %s293_s16 = scalar_lea.sflag (!%p4361_p13), [#allocation4], %s3708_s7  ;;  %s3714_s3 = scalar_lea.vmem (!%p4361_p13), [#allocation3], %s2105_s10 }
  0xbf   : > { %3333 = dma.done.wait (%p4362_p0), %s293_s16, 2048  }
  0xc0   : > { %3335 = vsyncadd (%p4362_p0), %s293_s16, 4294965248  ;;  %s301_s0 = sand.u32 1, %s3465_s26   ;;  %s2106_s30 = sshll.u32 %s3708_s7, 5 }
  0xc1   : > { %s302_s14 = scalar_lea.sflag [#allocation7], %s301_s0  ;;  %s3722_s12 = scalar_lea.vmem [#allocation6], %s2106_s30 }
  0xc2   : > { %3337 = dma.done.wait (%p4362_p0), %s302_s14, 512  }
  0xc3   : > { %3339 = vsyncadd (%p4362_p0), %s302_s14, 4294966784  ;;  %p4363_p9 = scmp.eq.s32.totalorder %s3465_s26, 0 }
  0xc5   : > { %3341 = dma.done.wait (%p4363_p9), [#allocation7], 2048   ;;  %p4364_p11 = pmov %p4363_p9 }
  0xc6   : > { %p4365_p1 = pmov %p4363_p9 }
  0xc7   : > { %3343 = vsyncadd (%p4364_p11), [#allocation7], 4294965248 }
  0xc8   : > { %3345 = dma.done.wait (%p4365_p1), [#allocation10], 20480   ;;  %p4366_p4 = pmov %p4365_p1 }
  0xc9   : > { %v371_v0 = vld [vmem:[#allocation8] sm:$0xff]  ;;  %v372_v1 = vld [vmem:[#allocation8 + $0x8] sm:$0xff]  ;;  %v373_v2 = vld [vmem:[#allocation8 + $0x10] sm:$0xff]  ;;  %vm592_vm0 = vcmask 1040384   ;;  %s4228_s26 = scalar_lea.vmem [#allocation12], %s2105_s10  ;;  %s2119_s28 = sshll.u32 %s3366_s21, 4 }
  0xca   : > { %3347 = vsyncadd (%p4366_p4), [#allocation10], 4294946816  ;;  %v2714_v3 = vpack.c.bf16 %v372_v1, %v371_v0  ;;  %v374_v4 = vld [vmem:[#allocation8 + $0x18] sm:$0xff]  ;;  %v375_v6 = vld [vmem:[#allocation8 + $0x20] sm:$0xff]  ;;  %s2114_s11 = sshll.u32 %s3370_s22, 5  ;;  %s1944_s22 = sshll.u32 %s4228_s26, 4  ;;  %s4262_s22 = int_to_ptr.vmem [resolvable:$true] %s1944_s22 }
  0xcb   : > { %v2718_v5 = vpack.c.bf16 %v374_v4, %v373_v2  ;;  %v376_v7 = vld [vmem:[#allocation8 + $0x28] sm:$0xff]  ;;  %v367_v9 = vld [vmem:[%s3722_s12] sm:$0xff]  ;;  %v377_v10 = vld [vmem:[#allocation8 + $0x30] sm:$0xff]  ;;  %s1941_s5 = sadd.s32 %s2119_s28, %s2114_s11  ;;  %s4369_s4 = sld [smem:[#allocation26_spill]] }
  0xcc   : > { %2715 = vmatprep.subr.bf16.mxu0 %v2714_v3  ;;  %v2722_v8 = vpack.c.bf16 %v376_v7, %v375_v6  ;;  %v378_v11 = vld [vmem:[#allocation8 + $0x38] sm:$0xff]  ;;  %2572 = vmatprep.mubr.f32.mxu0 %v367_v9  ;;  %v379_v12 = vld [vmem:[#allocation8 + $0x40] sm:$0xff]  ;;  %v380_v14 = vld [vmem:[#allocation8 + $0x48] sm:$0xff]  ;;  %s2115_s21 = sshll.u32 %s1941_s5, 7  ;;  %s1928_s27 = scalar_lea.sflag [#allocation5], %s3708_s7 }
  0xcd   : > { %2717 = vmatpush3.bf16.msra.mxu0 %v2714_v3  ;;  %v2726_v13 = vpack.c.bf16 %v378_v11, %v377_v10  ;;  %v865_v15 = vld [vmem:[#allocation9 + $0x80] sm:$0xff]  ;;  %v866_v16 = vld [vmem:[#allocation9 + $0x88] sm:$0xff]  ;;  %v867_v20 = vld [vmem:[#allocation9 + $0x90] sm:$0xff]  ;;  %v2730_v26 = vpack.c.bf16 %v380_v14, %v379_v12  ;;  %s3272_s8 = scalar_lea.vmem %s4262_s22, 2048  ;;  %s3391_s2 = smov [#allocation12]  }
  0xce   : > { %2719 = vmatprep.subr.bf16.mxu0 %v2718_v5  ;;  %v2746_v17 = vpack.c.bf16 %v866_v16, %v865_v15  ;;  %v849_v18 = vld [vmem:[#allocation9] sm:$0xff]  ;;  %v850_v19 = vld [vmem:[#allocation9 + $0x8] sm:$0xff]  ;;  %v868_v22 = vld [vmem:[#allocation9 + $0x98] sm:$0xff]  ;;  %p3273_p8 = scmp.ne.s32.totalorder %s4262_s22, %s3272_s8  ;;  %s3276_s6 = sshll.u32 %s3391_s2, 4  ;;  %s3277_s6 = int_to_ptr.vmem [resolvable:$false] %s3276_s6 }
  0xcf   : > { %v2748_v21 = vpack.c.bf16 %v850_v19, %v849_v18  ;;  %v851_v23 = vld [vmem:[#allocation9 + $0x10] sm:$0xff]  ;;  %v852_v24 = vld [vmem:[#allocation9 + $0x18] sm:$0xff]  ;;  %v2750_v25 = vpack.c.bf16 %v868_v22, %v867_v20  ;;  %v869_v29 = vld [vmem:[#allocation9 + $0xa0] sm:$0xff]  ;;  %s3278_s9 = scalar_lea.vmem %s3277_s6, 4096  ;;  %p3279_p6 = scmp.lt.s32.totalorder %s4262_s22, %s3277_s6 }
  0xd0   : > { %2747 = vmatprep.subr.bf16.mxu1 %v2746_v17  ;;  %v381_v27 = vld [vmem:[#allocation8 + $0x50] sm:$0xff]  ;;  %v2752_v28 = vpack.c.bf16 %v852_v24, %v851_v23  ;;  %v870_v30 = vld [vmem:[#allocation9 + $0xa8] sm:$0xff]  ;;  %v382_v31 = vld [vmem:[#allocation8 + $0x58] sm:$0xff]  ;;  %p3274_p12 = pnand %p3273_p8, %p3595_p3  ;;  %p3280_p10 = scmp.lt.s32.totalorder %s3278_s9, %s3272_s8 }
  0xd1   : > { %2721 = vmatpush3.bf16.msra.mxu0 %v2718_v5  ;;  %2749 = vmatpush3.bf16.msra.mxu1 %v2748_v21  ;;  %v2754_v32 = vpack.c.bf16 %v870_v30, %v869_v29  ;;  %v853_v33 = vld [vmem:[#allocation9 + $0x20] sm:$0xff]  ;;  %v854_v34 = vld [vmem:[#allocation9 + $0x28] sm:$0xff]  ;;  %v871_v35 = vld [vmem:[#allocation9 + $0xb0] sm:$0xff]  ;;  %v2734_v37 = vpack.c.bf16 %v382_v31, %v381_v27  ;;  %s4260_s18 = scalar_lea.hbm %s4369_s4, %s2115_s21 }
  0xd2   : > { %2723 = vmatprep.subr.bf16.mxu0 %v2722_v8  ;;  %2751 = vmatprep.subr.bf16.mxu1 %v2750_v25  ;;  %v872_v36 = vld [vmem:[#allocation9 + $0xb8] sm:$0xff]  ;;  %v383_v38 = vld [vmem:[#allocation8 + $0x60] sm:$0xff]  ;;  %v2756_v39 = vpack.c.bf16 %v854_v34, %v853_v33  ;;  %v384_v40 = vld [vmem:[#allocation8 + $0x68] sm:$0xff]  ;;  %p3275_p2 = pneg %p3274_p12  ;;  %p3281_p5 = por %p3280_p10, %p3279_p6 }
  0xd3   : > { %v2758_v41 = vpack.c.bf16 %v872_v36, %v871_v35  ;;  %v855_v42 = vld [vmem:[#allocation9 + $0x30] sm:$0xff]  ;;  %v856_v43 = vld [vmem:[#allocation9 + $0x38] sm:$0xff]  ;;  %v873_v44 = vld [vmem:[#allocation9 + $0xc0] sm:$0xff]  ;;  %v2738_v46 = vpack.c.bf16 %v384_v40, %v383_v38 }
  0xd4   : > { %v874_v45 = vld [vmem:[#allocation9 + $0xc8] sm:$0xff]  ;;  %v2760_v47 = vpack.c.bf16 %v856_v43, %v855_v42  ;;  %v385_v48 = vld [vmem:[#allocation8 + $0x70] sm:$0xff]  ;;  %v386_v49 = vld [vmem:[#allocation8 + $0x78] sm:$0xff]  ;;  %p3282_p7 = pnand %p3281_p5, %p3275_p2 }
  0xd5   : > { %2725 = vmatpush3.bf16.msra.mxu0 %v2722_v8  ;;  %2753 = vmatpush3.bf16.msra.mxu1 %v2752_v28  ;;  %v2762_v50 = vpack.c.bf16 %v874_v45, %v873_v44  ;;  %v2742_v51 = vpack.c.bf16 %v386_v49, %v385_v48  ;;  %v897_v52 = vld [vmem:[#allocation9 + $0x180] sm:$0xff]  ;;  %v898_v53 = vld [vmem:[#allocation9 + $0x188] sm:$0xff]  ;;  %v899_v57 = vld [vmem:[#allocation9 + $0x190] sm:$0xff] }
  0xd6   : > { %2727 = vmatprep.subr.bf16.mxu0 %v2726_v13  ;;  %2755 = vmatprep.subr.bf16.mxu1 %v2754_v32  ;;  %v2778_v54 = vpack.c.bf16 %v898_v53, %v897_v52  ;;  %v881_v55 = vld [vmem:[#allocation9 + $0x100] sm:$0xff]  ;;  %v882_v56 = vld [vmem:[#allocation9 + $0x108] sm:$0xff]  ;;  %v900_v58 = vld [vmem:[#allocation9 + $0x198] sm:$0xff] }
  0xd7   : > { %v368_v59 = vld [vmem:[%s3722_s12 + $0x8] sm:$0xff]  ;;  %v2780_v60 = vpack.c.bf16 %v882_v56, %v881_v55  ;;  %v2782_v61 = vpack.c.bf16 %v900_v58, %v899_v57  ;;  %v883_v62 = vld [vmem:[#allocation9 + $0x110] sm:$0xff]  ;;  %v884_v63 = vld [vmem:[#allocation9 + $0x118] sm:$0xff] }
  0xd8   : > { %v901_v0 = vld [vmem:[#allocation9 + $0x1a0] sm:$0xff]  ;;  %v902_v1 = vld [vmem:[#allocation9 + $0x1a8] sm:$0xff]  ;;  %v2784_v3 = vpack.c.bf16 %v884_v63, %v883_v62  ;;  %v354_v7 = vld [vmem:[%s3714_s3 + $0x18] sm:$0xff] }
  0xd9   : > { %2729 = vmatpush3.bf16.msra.mxu0 %v2726_v13  ;;  %2757 = vmatpush3.bf16.msra.mxu1 %v2756_v39  ;;  %v352_v2 = vld [vmem:[%s3714_s3 + $0x8] sm:$0xff]  ;;  %v2786_v4 = vpack.c.bf16 %v902_v1, %v901_v0  ;;  %v885_v5 = vld [vmem:[#allocation9 + $0x120] sm:$0xff]  ;;  %v358_v10 = vld [vmem:[%s3714_s3 + $0x38] sm:$0xff] }
  0xda   : > { %2731 = vmatprep.subr.bf16.mxu0 %v2730_v26  ;;  %2759 = vmatprep.subr.bf16.mxu1 %v2758_v41  ;;  %v886_v6 = vld [vmem:[#allocation9 + $0x128] sm:$0xff]  ;;  %v362_v12 = vld [vmem:[%s3714_s3 + $0x58] sm:$0xff]  ;;  %v369_v15 = vld [vmem:[%s3722_s12 + $0x10] sm:$0xff] }
  0xdb   : > { %v2788_v8 = vpack.c.bf16 %v886_v6, %v885_v5  ;;  %v356_v9 = vld [vmem:[%s3714_s3 + $0x28] sm:$0xff]  ;;  %v366_v14 = vld [vmem:[%s3714_s3 + $0x78] sm:$0xff]  ;;  %v903_v17 = vld [vmem:[#allocation9 + $0x1b0] sm:$0xff] }
  0xdc   : > { %v360_v11 = vld [vmem:[%s3714_s3 + $0x48] sm:$0xff]  ;;  %v370_v16 = vld [vmem:[%s3722_s12 + $0x18] sm:$0xff]  ;;  %v887_v20 = vld [vmem:[#allocation9 + $0x130] sm:$0xff] }
  0xdd   : > { %2733 = vmatpush3.bf16.msra.mxu0 %v2730_v26  ;;  %2761 = vmatpush3.bf16.msra.mxu1 %v2760_v47  ;;  %v364_v13 = vld [vmem:[%s3714_s3 + $0x68] sm:$0xff]  ;;  %v904_v18 = vld [vmem:[#allocation9 + $0x1b8] sm:$0xff]  ;;  %v905_v23 = vld [vmem:[#allocation9 + $0x1c0] sm:$0xff] }
  0xde   : > { %2735 = vmatprep.subr.bf16.mxu0 %v2734_v37  ;;  %2763 = vmatprep.subr.bf16.mxu1 %v2762_v50  ;;  %v2790_v19 = vpack.c.bf16 %v904_v18, %v903_v17  ;;  %v888_v21 = vld [vmem:[#allocation9 + $0x138] sm:$0xff]  ;;  %v906_v24 = vld [vmem:[#allocation9 + $0x1c8] sm:$0xff]  ;;  %v889_v26 = vld [vmem:[#allocation9 + $0x140] sm:$0xff] }
  0xdf   : > { %v2792_v22 = vpack.c.bf16 %v888_v21, %v887_v20  ;;  %v2794_v25 = vpack.c.bf16 %v906_v24, %v905_v23  ;;  %v890_v27 = vld [vmem:[#allocation9 + $0x148] sm:$0xff]  ;;  %v857_v28 = vld [vmem:[#allocation9 + $0x40] sm:$0xff]  ;;  %v907_v32 = vld [vmem:[#allocation9 + $0x1d0] sm:$0xff] }
  0xe0   : > { %v858_v29 = vld [vmem:[#allocation9 + $0x48] sm:$0xff]  ;;  %v2796_v30 = vpack.c.bf16 %v890_v27, %v889_v26  ;;  %v908_v33 = vld [vmem:[#allocation9 + $0x1d8] sm:$0xff]  ;;  %v875_v34 = vld [vmem:[#allocation9 + $0xd0] sm:$0xff] }
  0xe1   : > { %2737 = vmatpush3.bf16.msra.mxu0 %v2734_v37  ;;  %v2764_v31 = vpack.c.bf16 %v858_v29, %v857_v28  ;;  %v876_v35 = vld [vmem:[#allocation9 + $0xd8] sm:$0xff]  ;;  %v2798_v36 = vpack.c.bf16 %v908_v33, %v907_v32  ;;  %v891_v37 = vld [vmem:[#allocation9 + $0x150] sm:$0xff]  ;;  %v909_v44 = vld [vmem:[#allocation9 + $0x1e0] sm:$0xff] }
  0xe2   : > { %2739 = vmatprep.subr.bf16.mxu0 %v2738_v46  ;;  %v2766_v38 = vpack.c.bf16 %v876_v35, %v875_v34  ;;  %v859_v39 = vld [vmem:[#allocation9 + $0x50] sm:$0xff]  ;;  %v860_v40 = vld [vmem:[#allocation9 + $0x58] sm:$0xff]  ;;  %v910_v45 = vld [vmem:[#allocation9 + $0x1e8] sm:$0xff] }
  0xe3   : > { %2765 = vmatpush3.bf16.msra.mxu1 %v2764_v31  ;;  %v892_v41 = vld [vmem:[#allocation9 + $0x158] sm:$0xff]  ;;  %v2768_v42 = vpack.c.bf16 %v860_v40, %v859_v39  ;;  %v878_v47 = vld [vmem:[#allocation9 + $0xe8] sm:$0xff]  ;;  %v2802_v48 = vpack.c.bf16 %v910_v45, %v909_v44  ;;  %v893_v49 = vld [vmem:[#allocation9 + $0x160] sm:$0xff] }
  0xe4   : > { %v2800_v43 = vpack.c.bf16 %v892_v41, %v891_v37  ;;  %2767 = vmatprep.subr.bf16.mxu1 %v2766_v38  ;;  %v862_v52 = vld [vmem:[#allocation9 + $0x68] sm:$0xff]  ;;  %v911_v56 = vld [vmem:[#allocation9 + $0x1f0] sm:$0xff]  ;;  %v912_v57 = vld [vmem:[#allocation9 + $0x1f8] sm:$0xff] }
  0xe5   : > { %2741 = vmatpush3.bf16.msra.mxu0 %v2738_v46  ;;  %v877_v46 = vld [vmem:[#allocation9 + $0xe0] sm:$0xff]  ;;  %v894_v53 = vld [vmem:[#allocation9 + $0x168] sm:$0xff]  ;;  %v879_v58 = vld [vmem:[#allocation9 + $0xf0] sm:$0xff] }
  0xe6   : > { %2743 = vmatprep.subr.bf16.mxu0 %v2742_v51  ;;  %v2770_v50 = vpack.c.bf16 %v878_v47, %v877_v46  ;;  %v2804_v55 = vpack.c.bf16 %v894_v53, %v893_v49  ;;  %v863_v63 = vld [vmem:[#allocation9 + $0x70] sm:$0xff]  ;;  %v864_v0 = vld [vmem:[#allocation9 + $0x78] sm:$0xff]  ;;  %v930_v5 = vld [vmem:[#allocation9 + $0x288] sm:$0xff] }
  0xe7   : > { %2769 = vmatpush3.bf16.msra.mxu1 %v2768_v42  ;;  %v896_v1 = vld [vmem:[#allocation9 + $0x178] sm:$0xff]  ;;  %v913_v29 = vld [vmem:[#allocation9 + $0x200] sm:$0xff]  ;;  %v914_v33 = vld [vmem:[#allocation9 + $0x208] sm:$0xff] }
  0xe8   : > { %2771 = vmatprep.subr.bf16.mxu1 %v2770_v50  ;;  %v931_v34 = vld [vmem:[#allocation9 + $0x290] sm:$0xff]  ;;  %v932_v35 = vld [vmem:[#allocation9 + $0x298] sm:$0xff]  ;;  %vm3765_vm1 = vmneg %vm592_vm0  ;;  %v2812_v45 = vpack.c.bf16 %v914_v33, %v913_v29 }
  0xe9   : > { %2745 = vmatpush3.bf16.msra.mxu0 %v2742_v51  ;;  %v861_v51 = vld [vmem:[#allocation9 + $0x60] sm:$0xff]  ;;  %v946_v39 = vld [vmem:[#allocation9 + $0x308] sm:$0xff]  ;;  %v963_v42 = vld [vmem:[#allocation9 + $0x390] sm:$0xff] }
  0xea   : > { %2779 = vmatprep.subr.bf16.mxu0 %v2778_v54  ;;  %v2772_v54 = vpack.c.bf16 %v862_v52, %v861_v51  ;;  %v945_v38 = vld [vmem:[#allocation9 + $0x300] sm:$0xff]  ;;  %v915_v49 = vld [vmem:[#allocation9 + $0x210] sm:$0xff]  ;;  %v916_v50 = vld [vmem:[#allocation9 + $0x218] sm:$0xff] }
  0xeb   : > { %v3775_v51 = vld [vmem:[#allocation9 + $0x2a0] sm:$0xff]  ;;  %v968_v29 = vld [vmem:[#allocation9 + $0x3b8] sm:$0xff] }
  0xec   : > { %2573 = vmatmul.mubr.f32.vlgmr.msra.gmra.mrb[0].mxu0 %v368_v59  ;;  %2773 = vmatpush3.bf16.msra.mxu1 %v2772_v54  ;;  %v880_v59 = vld [vmem:[#allocation9 + $0xf8] sm:$0xff] }
  0xed   : > { %2781 = vmatpush3.bf16.msra.mxu0 %v2780_v60  ;;  %v2806_v60 = vpack.c.bf16 %v912_v57, %v911_v56  ;;  %v2774_v62 = vpack.c.bf16 %v880_v59, %v879_v58  ;;  %v3783_v57 = vld [vmem:[#allocation9 + $0x2a8] sm:$0xff]  ;;  %v2844_v58 = vpack.c.bf16 %v946_v39, %v945_v38 }
  0xee   : > { %2783 = vmatprep.subr.bf16.mxu0 %v2782_v61  ;;  %v895_v61 = vld [vmem:[#allocation9 + $0x170] sm:$0xff] }
  0xef   : > { %2775 = vmatprep.subr.bf16.mxu1 %v2774_v62  ;;  %v948_v62 = vld [vmem:[#allocation9 + $0x318] sm:$0xff] }
  0xf0   : > { %2576 = vmatmul.mubr.f32.gmra.mrb[2].mxu0 %v352_v2  ;;  %v2776_v2 = vpack.c.bf16 %v864_v0, %v863_v63 }
  0xf1   : > { %2785 = vmatpush3.bf16.msra.mxu0 %v2784_v3  ;;  %v2808_v3 = vpack.c.bf16 %v896_v1, %v895_v61  ;;  %v947_v61 = vld [vmem:[#allocation9 + $0x310] sm:$0xff] }
  0xf2   : > { %2787 = vmatprep.subr.bf16.mxu0 %v2786_v4  ;;  %2777 = vmatpush3.bf16.msra.mxu1 %v2776_v2  ;;  %v929_v4 = vld [vmem:[#allocation9 + $0x280] sm:$0xff] }
  0xf3   : > { %v2810_v6 = vpack.c.bf16 %v930_v5, %v929_v4  ;;  %v965_v2 = vld [vmem:[#allocation9 + $0x3a0] sm:$0xff]  ;;  %v2816_v5 = vpack.c.bf16 %v916_v50, %v915_v49 }
  0xf4   : > { %2579 = vmatmul.mubr.f32.gmra.mrb[4].mxu0 %v354_v7  ;;  %v961_v7 = vld [vmem:[#allocation9 + $0x380] sm:$0xff] }
  0xf5   : > { %2789 = vmatpush3.bf16.msra.mxu0 %v2788_v8  ;;  %2811 = vmatprep.subr.bf16.mxu1 %v2810_v6  ;;  %v962_v8 = vld [vmem:[#allocation9 + $0x388] sm:$0xff] }
  0xf6   : > { %2791 = vmatprep.subr.bf16.mxu0 %v2790_v19 }
  0xf8   : > { %2582 = vmatmul.mubr.f32.gmra.mrb[6].mxu0 %v356_v9  ;;  %v2842_v9 = vpack.c.bf16 %v962_v8, %v961_v7  ;;  %v2818_v8 = vpack.c.bf16 %v3783_v57, %v3775_v51 }
  0xf9   : > { %2793 = vmatpush3.bf16.msra.mxu0 %v2792_v22 }
  0xfa   : > { %2795 = vmatprep.subr.bf16.mxu0 %v2794_v25 }
  0xfc   : > { %2585 = vmatmul.mubr.f32.gmra.mrb[8].mxu0 %v358_v10 }
  0xfd   : > { %2797 = vmatpush3.bf16.msra.mxu0 %v2796_v30 }
  0xfe   : > { %2799 = vmatprep.subr.bf16.mxu0 %v2798_v36 }
 0x100   : > { %2588 = vmatmul.mubr.f32.gmra.mrb[10].mxu0 %v360_v11 }
 0x101   : > { %2801 = vmatpush3.bf16.msra.mxu0 %v2800_v43  ;;  %v964_v43 = vld [vmem:[#allocation9 + $0x398] sm:$0xff] }
 0x102   : > { %2803 = vmatprep.subr.bf16.mxu0 %v2802_v48  ;;  %v2814_v48 = vpack.c.bf16 %v932_v35, %v931_v34  ;;  %v919_v35 = vld [vmem:[#allocation9 + $0x230] sm:$0xff] }
 0x104   : > { %2591 = vmatmul.mubr.f32.gmra.mrb[12].mxu0 %v362_v12 }
 0x105   : > { %2805 = vmatpush3.bf16.msra.mxu0 %v2804_v55 }
 0x106   : > { %2807 = vmatprep.subr.bf16.mxu0 %v2806_v60  ;;  %v2846_v60 = vpack.c.bf16 %v964_v43, %v963_v42  ;;  %v3825_v42 = vld [vmem:[#allocation9 + $0x2c0] sm:$0xff]  ;;  %v3827_v43 = vld [vmem:[#allocation9 + $0x2c8] sm:$0xff] }
 0x108   : > { %2594 = vmatmul.mubr.f32.gmra.mrb[14].mxu0 %v364_v13 }
 0x109   : > { %2809 = vmatpush3.bf16.msra.mxu0 %v2808_v3  ;;  %v966_v3 = vld [vmem:[#allocation9 + $0x3a8] sm:$0xff] }
 0x10a   : > { %2843 = vmatprep.subr.bf16.mxu0 %v2842_v9  ;;  %v917_v9 = vld [vmem:[#allocation9 + $0x220] sm:$0xff] }
 0x10c   : > { %2597 = vmatmul.mubr.f32.gmra.mrb[16].mxu0 %v366_v14 }
 0x10d   : > { %2599 = vmatprep.mubr.f32.mxu0 %v369_v15 }
 0x110   : > { %2600 = vmatmul.mubr.f32.gmra.mrb[18].mxu0 %v370_v16 }
 0x1bf   : > { %v2574_v10 = vpop.f32.mrb[0].mxu0 }
 0x1c0   : > { %v553_v11 = vmax.f32 %v2574_v10, 0.0  ;;  %v453_v12 = vpop.f32.mrb[1].mxu0  ;;  %v918_v10 = vld [vmem:[#allocation9 + $0x228] sm:$0xff] }
 0x1c1   : > { %v552_v13 = vmax.f32 %v453_v12, 0.0 }
 0x1c2   : > { %v594_v14 = vrot.slane %v553_v11, 7  ;;  %v3794_v11 = vld [vmem:[#allocation9 + $0x2b0] sm:$0xff] }
 0x1c3   : > { %v593_v15 = vrot.slane %v552_v13, 7  ;;  %v2577_v16 = vpop.f32.mrb[2].mxu0 }
 0x1c4   : > { %v663_v17 = vsel %vm592_vm0, %v594_v14, 0.0  ;;  %v555_v18 = vmax.f32 %v2577_v16, 0.0  ;;  %v463_v19 = vpop.f32.mrb[3].mxu0 }
 0x1c5   : > { %675 = vst [vmem:[#allocation2 + $0x10] sm:$0x3] %v663_v17  ;;  %v3750_v20 = vsel %vm592_vm0, %v593_v15, %v594_v14  ;;  %v653_v21 = vsel %vm592_vm0, 0.0, %v593_v15  ;;  %v554_v22 = vmax.f32 %v463_v19, 0.0  ;;  %v3804_v17 = vld [vmem:[#allocation9 + $0x2b8] sm:$0xff] }
 0x1c6   : > { %673 = vst [vmem:[#allocation2] sm:$0xff] %v653_v21  ;;  %674 = vst [vmem:[#allocation2 + $0x8] sm:$0xff] %v3750_v20  ;;  %v597_v23 = vrot.slane %v555_v18, 7  ;;  %v2848_v18 = vpack.c.bf16 %v948_v62, %v947_v61  ;;  %v2850_v21 = vpack.c.bf16 %v966_v3, %v965_v2  ;;  %v3843_v61 = vld [vmem:[#allocation9 + $0x2d0] sm:$0xff] }
 0x1c7   : > { %v3754_v24 = vrot.slane %v554_v22, 7  ;;  %v2580_v25 = vpop.f32.mrb[4].mxu0  ;;  %v949_v22 = vld [vmem:[#allocation9 + $0x320] sm:$0xff] }
 0x1c8   : > { %v664_v26 = vsel %vm592_vm0, %v597_v23, 0.0  ;;  %v557_v27 = vmax.f32 %v2580_v25, 0.0  ;;  %v473_v28 = vpop.f32.mrb[5].mxu0 }
 0x1c9   : > { %678 = vst [vmem:[#allocation2 + $0x28] sm:$0x3] %v664_v26  ;;  %v3759_v30 = vsel %vm592_vm0, %v3754_v24, %v597_v23  ;;  %v654_v31 = vsel %vm592_vm0, 0.0, %v3754_v24  ;;  %v556_v32 = vmax.f32 %v473_v28, 0.0  ;;  %3081 = vmatprep.mubr.msk.f32.mxu0 %vm3765_vm1, %v3754_v24  ;;  %v950_v23 = vld [vmem:[#allocation9 + $0x328] sm:$0xff]  ;;  %v967_v28 = vld [vmem:[#allocation9 + $0x3b0] sm:$0xff] }
 0x1ca   : > { %676 = vst [vmem:[#allocation2 + $0x18] sm:$0xff] %v654_v31  ;;  %677 = vst [vmem:[#allocation2 + $0x20] sm:$0xff] %v3759_v30  ;;  %v600_v36 = vrot.slane %v557_v27, 7 }
 0x1cb   : > { %v3772_v40 = vrot.slane %v556_v32, 7  ;;  %v2583_v41 = vpop.f32.mrb[6].mxu0  ;;  %v2820_v32 = vpack.c.bf16 %v918_v10, %v917_v9  ;;  %v954_v9 = vld [vmem:[#allocation9 + $0x348] sm:$0xff] }
 0x1cc   : > { %v665_v44 = vsel %vm592_vm0, %v600_v36, 0.0  ;;  %v559_v46 = vmax.f32 %v2583_v41, 0.0  ;;  %v483_v47 = vpop.f32.mrb[7].mxu0  ;;  %v920_v41 = vld [vmem:[#allocation9 + $0x238] sm:$0xff] }
 0x1cd   : > { %681 = vst [vmem:[#allocation2 + $0x40] sm:$0x3] %v665_v44  ;;  %v3779_v52 = vsel %vm592_vm0, %v3772_v40, %v600_v36  ;;  %v655_v53 = vsel %vm592_vm0, 0.0, %v3772_v40  ;;  %v719_v54 = vld [vmem:[#allocation2 + $0x1] sm:$0xff]  ;;  %v558_v56 = vmax.f32 %v483_v47, 0.0  ;;  %v720_v63 = vld [vmem:[#allocation2 + $0x9] sm:$0xff]  ;;  %v2852_v44 = vpack.c.bf16 %v950_v23, %v949_v22 }
 0x1ce   : > { %v735_v55 = vld [vmem:[#allocation2 + $0x2] sm:$0xff]  ;;  %679 = vst [vmem:[#allocation2 + $0x30] sm:$0xff] %v655_v53  ;;  %680 = vst [vmem:[#allocation2 + $0x38] sm:$0xff] %v3779_v52  ;;  %1057 = vmatprep.mubr.f32.mxu1 %v719_v54  ;;  %v603_v59 = vrot.slane %v559_v46, 7  ;;  %v2854_v46 = vpack.c.bf16 %v968_v29, %v967_v28  ;;  %v969_v53 = vld [vmem:[#allocation9 + $0x3c0] sm:$0xff] }
 0x1cf   : > { %1203 = vmatmul.mubr.f32.vlgmr.msra.gmra.mrb[20].mxu0 %v735_v55  ;;  %3083 = vmatmul.mubr.msk.f32.vlgmr.msra.gmra.mrb[0].mxu1 %vm3765_vm1, %v593_v15  ;;  %v3788_v0 = vrot.slane %v558_v56, 7  ;;  %v2586_v1 = vpop.f32.mrb[8].mxu0  ;;  %v736_v15 = vld [vmem:[#allocation2 + $0xa] sm:$0xff]  ;;  %v951_v47 = vld [vmem:[#allocation9 + $0x330] sm:$0xff]  ;;  %v970_v54 = vld [vmem:[#allocation9 + $0x3c8] sm:$0xff]  ;;  %v2824_v56 = vpack.c.bf16 %v920_v41, %v919_v35 }
 0x1d0   : > { %1207 = vmatprep.mubr.f32.mxu0 %v3759_v30  ;;  %2813 = vmatpush3.bf16.msra.mxu1 %v2812_v45  ;;  %v666_v4 = vsel %vm592_vm0, %v603_v59, 0.0  ;;  %v561_v6 = vmax.f32 %v2586_v1, 0.0  ;;  %v493_v7 = vpop.f32.mrb[9].mxu0  ;;  %v923_v22 = vld [vmem:[#allocation9 + $0x250] sm:$0xff]  ;;  %v924_v29 = vld [vmem:[#allocation9 + $0x258] sm:$0xff] }
 0x1d1   : > { %1062 = vmatprep.mubr.f32.mxu1 %v720_v63  ;;  %684 = vst [vmem:[#allocation2 + $0x58] sm:$0x3] %v666_v4  ;;  %v3798_v12 = vsel %vm592_vm0, %v3788_v0, %v603_v59  ;;  %v656_v13 = vsel %vm592_vm0, 0.0, %v3788_v0  ;;  %v3802_v14 = vld [vmem:[#allocation2 + $0x19] sm:$0xff]  ;;  %2815 = vmatprep.subr.bf16.mxu1 %v2814_v48  ;;  %v560_v16 = vmax.f32 %v493_v7, 0.0  ;;  %v952_v48 = vld [vmem:[#allocation9 + $0x338] sm:$0xff]  ;;  %v2858_v7 = vpack.c.bf16 %v970_v54, %v969_v53 }
 0x1d2   : > { %2845 = vmatpush3.bf16.msra.mxu0 %v2844_v58  ;;  %682 = vst [vmem:[#allocation2 + $0x48] sm:$0xff] %v656_v13  ;;  %683 = vst [vmem:[#allocation2 + $0x50] sm:$0xff] %v3798_v12  ;;  %v606_v19 = vrot.slane %v561_v6, 7  ;;  %v3811_v25 = vld [vmem:[#allocation2 + $0x1a] sm:$0xff]  ;;  %v921_v59 = vld [vmem:[#allocation9 + $0x240] sm:$0xff] }
 0x1d3   : > { %1208 = vmatmul.mubr.f32.gmra.mrb[22].mxu0 %v736_v15  ;;  %2847 = vmatprep.subr.bf16.mxu0 %v2846_v60  ;;  %v3813_v26 = vrot.slane %v560_v16, 7  ;;  %v2589_v27 = vpop.f32.mrb[10].mxu0  ;;  %v3834_v49 = vld [vmem:[#allocation2 + $0x21] sm:$0xff]  ;;  %v922_v60 = vld [vmem:[#allocation9 + $0x248] sm:$0xff]  ;;  %v925_v53 = vld [vmem:[#allocation9 + $0x260] sm:$0xff] }
 0x1d4   : > { %1063 = vmatmul.mubr.f32.gmra.mrb[2].mxu1 %v3750_v20  ;;  %3085 = vmatprep.mubr.msk.f32.mxu0 %vm3765_vm1, %v3772_v40  ;;  %v667_v31 = vsel %vm592_vm0, %v606_v19, 0.0  ;;  %v563_v33 = vmax.f32 %v2589_v27, 0.0  ;;  %v503_v34 = vpop.f32.mrb[11].mxu0  ;;  %v2822_v20 = vpack.c.bf16 %v3804_v17, %v3794_v11  ;;  %v3847_v63 = vld [vmem:[#allocation2 + $0x22] sm:$0xff]  ;;  %v926_v54 = vld [vmem:[#allocation9 + $0x268] sm:$0xff] }
 0x1d5   : > { %1067 = vmatprep.mubr.f32.mxu1 %v3802_v14  ;;  %2817 = vmatpush3.bf16.msra.mxu1 %v2816_v5  ;;  %687 = vst [vmem:[#allocation2 + $0x70] sm:$0x3] %v667_v31  ;;  %v3821_v36 = vsel %vm592_vm0, %v3813_v26, %v606_v19  ;;  %v657_v38 = vsel %vm592_vm0, 0.0, %v3813_v26  ;;  %v562_v39 = vmax.f32 %v503_v34, 0.0  ;;  %v3845_v62 = vld [vmem:[#allocation2 + $0x31] sm:$0xff]  ;;  %v3855_v4 = vld [vmem:[#allocation9 + $0x2d8] sm:$0xff]  ;;  %v2856_v5 = vpack.c.bf16 %v952_v48, %v951_v47 }
 0x1d6   : > { %2819 = vmatprep.subr.bf16.mxu1 %v2818_v8  ;;  %2849 = vmatpush3.bf16.msra.mxu0 %v2848_v18  ;;  %685 = vst [vmem:[#allocation2 + $0x60] sm:$0xff] %v657_v38  ;;  %686 = vst [vmem:[#allocation2 + $0x68] sm:$0xff] %v3821_v36  ;;  %v609_v45 = vrot.slane %v563_v33, 7  ;;  %v953_v8 = vld [vmem:[#allocation9 + $0x340] sm:$0xff]  ;;  %v971_v15 = vld [vmem:[#allocation9 + $0x3d0] sm:$0xff]  ;;  %v2828_v18 = vpack.c.bf16 %v922_v60, %v921_v59 }
 0x1d7   : > { %1213 = vmatmul.mubr.f32.gmra.mrb[24].mxu0 %v3811_v25  ;;  %2851 = vmatprep.subr.bf16.mxu0 %v2850_v21  ;;  %v3837_v50 = vrot.slane %v562_v39, 7  ;;  %v2592_v51 = vpop.f32.mrb[12].mxu0  ;;  %v3863_v10 = vld [vmem:[#allocation2 + $0x32] sm:$0xff]  ;;  %v972_v16 = vld [vmem:[#allocation9 + $0x3d8] sm:$0xff]  ;;  %v2860_v33 = vpack.c.bf16 %v954_v9, %v953_v8  ;;  %v955_v35 = vld [vmem:[#allocation9 + $0x350] sm:$0xff] }
 0x1d8   : > { %3087 = vmatmul.mubr.msk.f32.gmra.mrb[4].mxu1 %vm3765_vm1, %v3754_v24  ;;  %1217 = vmatprep.mubr.f32.mxu0 %v3779_v52  ;;  %v668_v55 = vsel %vm592_vm0, %v609_v45, 0.0  ;;  %v565_v57 = vmax.f32 %v2592_v51, 0.0  ;;  %v513_v58 = vpop.f32.mrb[13].mxu0  ;;  %v2826_v24 = vpack.c.bf16 %v3827_v43, %v3825_v42  ;;  %v3877_v31 = vld [vmem:[#allocation9 + $0x2e0] sm:$0xff]  ;;  %v956_v38 = vld [vmem:[#allocation9 + $0x358] sm:$0xff]  ;;  %v3886_v39 = vld [vmem:[#allocation2 + $0x39] sm:$0xff] }
 0x1d9   : > { %1072 = vmatprep.mubr.f32.mxu1 %v3834_v49  ;;  %2821 = vmatpush3.bf16.msra.mxu1 %v2820_v32  ;;  %690 = vst [vmem:[#allocation2 + $0x88] sm:$0x3] %v668_v55  ;;  %v3851_v1 = vsel %vm592_vm0, %v3837_v50, %v609_v45  ;;  %v658_v2 = vsel %vm592_vm0, 0.0, %v3837_v50  ;;  %v564_v3 = vmax.f32 %v513_v58, 0.0  ;;  %v3879_v32 = vld [vmem:[#allocation9 + $0x2e8] sm:$0xff]  ;;  %v973_v43 = vld [vmem:[#allocation9 + $0x3e0] sm:$0xff] }
 0x1da   : > { %2823 = vmatprep.subr.bf16.mxu1 %v2822_v20  ;;  %2853 = vmatpush3.bf16.msra.mxu0 %v2852_v44  ;;  %688 = vst [vmem:[#allocation2 + $0x78] sm:$0xff] %v658_v2  ;;  %689 = vst [vmem:[#allocation2 + $0x80] sm:$0xff] %v3851_v1  ;;  %v612_v6 = vrot.slane %v565_v57, 7  ;;  %v2862_v20 = vpack.c.bf16 %v972_v16, %v971_v15  ;;  %v974_v44 = vld [vmem:[#allocation9 + $0x3e8] sm:$0xff]  ;;  %v2834_v51 = vpack.c.bf16 %v3879_v32, %v3877_v31  ;;  %v943_v55 = vld [vmem:[#allocation9 + $0x2f0] sm:$0xff] }
 0x1db   : > { %1218 = vmatmul.mubr.f32.gmra.mrb[26].mxu0 %v3847_v63  ;;  %2855 = vmatprep.subr.bf16.mxu0 %v2854_v46  ;;  %v3865_v11 = vrot.slane %v564_v3, 7  ;;  %v2595_v13 = vpop.f32.mrb[14].mxu0  ;;  %v2832_v46 = vpack.c.bf16 %v924_v29, %v923_v22  ;;  %v3897_v57 = vld [vmem:[#allocation2 + $0x3a] sm:$0xff]  ;;  %v944_v60 = vld [vmem:[#allocation9 + $0x2f8] sm:$0xff]  ;;  %v2866_v3 = vpack.c.bf16 %v974_v44, %v973_v43  ;;  %v2836_v16 = vpack.c.bf16 %v926_v54, %v925_v53  ;;  %v977_v32 = vld [vmem:[#allocation9 + $0x400] sm:$0xff] }
 0x1dc   : > { %1073 = vmatmul.mubr.f32.gmra.mrb[6].mxu1 %v3759_v30  ;;  %3089 = vmatprep.mubr.msk.f32.mxu0 %vm3765_vm1, %v3788_v0  ;;  %v669_v17 = vsel %vm592_vm0, %v612_v6, 0.0  ;;  %v567_v19 = vmax.f32 %v2595_v13, 0.0  ;;  %v523_v21 = vpop.f32.mrb[15].mxu0  ;;  %v2830_v30 = vpack.c.bf16 %v3855_v4, %v3843_v61  ;;  %v2864_v61 = vpack.c.bf16 %v956_v38, %v955_v35  ;;  %v957_v4 = vld [vmem:[#allocation9 + $0x360] sm:$0xff]  ;;  %v975_v8 = vld [vmem:[#allocation9 + $0x3f0] sm:$0xff]  ;;  %v976_v9 = vld [vmem:[#allocation9 + $0x3f8] sm:$0xff] }
 0x1dd   : > { %1077 = vmatprep.mubr.f32.mxu1 %v3845_v62  ;;  %2825 = vmatpush3.bf16.msra.mxu1 %v2824_v56  ;;  %693 = vst [vmem:[#allocation2 + $0xa0] sm:$0x3] %v669_v17  ;;  %v3873_v23 = vsel %vm592_vm0, %v3865_v11, %v612_v6  ;;  %v659_v27 = vsel %vm592_vm0, 0.0, %v3865_v11  ;;  %v566_v28 = vmax.f32 %v523_v21, 0.0  ;;  %v3895_v56 = vld [vmem:[#allocation2 + $0x49] sm:$0xff]  ;;  %v2838_v17 = vpack.c.bf16 %v944_v60, %v943_v55  ;;  %v927_v22 = vld [vmem:[#allocation9 + $0x270] sm:$0xff] }
 0x1de   : > { %2827 = vmatprep.subr.bf16.mxu1 %v2826_v24  ;;  %2857 = vmatpush3.bf16.msra.mxu0 %v2856_v5  ;;  %691 = vst [vmem:[#allocation2 + $0x90] sm:$0xff] %v659_v27  ;;  %692 = vst [vmem:[#allocation2 + $0x98] sm:$0xff] %v3873_v23  ;;  %v615_v34 = vrot.slane %v567_v19, 7  ;;  %v958_v5 = vld [vmem:[#allocation9 + $0x368] sm:$0xff]  ;;  %v3911_v6 = vld [vmem:[#allocation2 + $0x4a] sm:$0xff] }
 0x1df   : > { %1223 = vmatmul.mubr.f32.gmra.mrb[28].mxu0 %v3863_v10  ;;  %2859 = vmatprep.subr.bf16.mxu0 %v2858_v7  ;;  %v3889_v41 = vrot.slane %v566_v28, 7  ;;  %v2598_v42 = vpop.f32.mrb[16].mxu0  ;;  %v928_v27 = vld [vmem:[#allocation9 + $0x278] sm:$0xff]  ;;  %v2868_v28 = vpack.c.bf16 %v958_v5, %v957_v4  ;;  %v959_v29 = vld [vmem:[#allocation9 + $0x370] sm:$0xff]  ;;  %v3928_v38 = vld [vmem:[#allocation2 + $0x51] sm:$0xff] }
 0x1e0   : > { %3091 = vmatmul.mubr.msk.f32.gmra.mrb[8].mxu1 %vm3765_vm1, %v3772_v40  ;;  %1227 = vmatprep.mubr.f32.mxu0 %v3798_v12  ;;  %v670_v45 = vsel %vm592_vm0, %v615_v34, 0.0  ;;  %v569_v47 = vmax.f32 %v2598_v42, 0.0  ;;  %v533_v48 = vpop.f32.mrb[17].mxu0  ;;  %v2840_v43 = vpack.c.bf16 %v928_v27, %v927_v22  ;;  %v3953_v54 = vld [vmem:[#allocation2 + $0x62] sm:$0xff]  ;;  %v982_v22 = vld [vmem:[#allocation9 + $0x428] sm:$0xff] }
 0x1e1   : > { %1082 = vmatprep.mubr.f32.mxu1 %v3886_v39  ;;  %2829 = vmatpush3.bf16.msra.mxu1 %v2828_v18  ;;  %696 = vst [vmem:[#allocation2 + $0xb8] sm:$0x3] %v670_v45  ;;  %v3901_v58 = vsel %vm592_vm0, %v3889_v41, %v615_v34  ;;  %v660_v24 = vsel %vm592_vm0, 0.0, %v3889_v41  ;;  %v568_v59 = vmax.f32 %v533_v48, 0.0  ;;  %v2870_v34 = vpack.c.bf16 %v976_v9, %v975_v8  ;;  %v3935_v45 = vld [vmem:[#allocation2 + $0x61] sm:$0xff]  ;;  %v3961_v55 = vld [vmem:[#allocation2 + $0x69] sm:$0xff] }
 0x1e2   : > { %2831 = vmatprep.subr.bf16.mxu1 %v2830_v30  ;;  %2861 = vmatpush3.bf16.msra.mxu0 %v2860_v33  ;;  %694 = vst [vmem:[#allocation2 + $0xa8] sm:$0xff] %v660_v24  ;;  %695 = vst [vmem:[#allocation2 + $0xb0] sm:$0xff] %v3901_v58  ;;  %v618_v2 = vrot.slane %v569_v47, 7  ;;  %v978_v33 = vld [vmem:[#allocation9 + $0x408] sm:$0xff] }
 0x1e3   : > { %1228 = vmatmul.mubr.f32.gmra.mrb[30].mxu0 %v3897_v57  ;;  %2863 = vmatprep.subr.bf16.mxu0 %v2862_v20  ;;  %v3913_v7 = vrot.slane %v568_v59, 7  ;;  %v2601_v13 = vpop.f32.mrb[18].mxu0  ;;  %v960_v20 = vld [vmem:[#allocation9 + $0x378] sm:$0xff]  ;;  %v3939_v47 = vpack.c.bf16 %v978_v33, %v977_v32  ;;  %v3965_v24 = vld [vmem:[#allocation2 + $0x79] sm:$0xff]  ;;  %v1738_v33 = vld [vmem:[#allocation11 + $0x20] sm:$0xff] }
 0x1e4   : > { %1083 = vmatmul.mubr.f32.gmra.mrb[10].mxu1 %v3779_v52  ;;  %3093 = vmatprep.mubr.msk.f32.mxu0 %vm3765_vm1, %v3813_v26  ;;  %v671_v15 = vsel %vm592_vm0, %v618_v2, 0.0  ;;  %v571_v18 = vmax.f32 %v2601_v13, 0.0  ;;  %v543_v19 = vpop.f32.mrb[19].mxu0  ;;  %v2872_v48 = vpack.c.bf16 %v960_v20, %v959_v29  ;;  %v3967_v59 = vld [vmem:[#allocation2 + $0x6a] sm:$0xff]  ;;  %v3974_v60 = vld [vmem:[#allocation2 + $0x7a] sm:$0xff] }
 0x1e5   : > { %1087 = vmatprep.mubr.f32.mxu1 %v3895_v56  ;;  %2833 = vmatpush3.bf16.msra.mxu1 %v2832_v46  ;;  %699 = vst [vmem:[#allocation2 + $0xd0] sm:$0x3] %v671_v15  ;;  %v3919_v21 = vsel %vm592_vm0, %v3913_v7, %v618_v2  ;;  %v661_v30 = vsel %vm592_vm0, 0.0, %v3913_v7  ;;  %v570_v31 = vmax.f32 %v543_v19, 0.0  ;;  %v3937_v46 = vld [vmem:[#allocation2 + $0x52] sm:$0xff]  ;;  %v4007_v9 = vld [vmem:[#allocation2 + $0x9a] sm:$0xff] }
 0x1e6   : > { %2835 = vmatprep.subr.bf16.mxu1 %v2834_v51  ;;  %2865 = vmatpush3.bf16.msra.mxu0 %v2864_v61  ;;  %697 = vst [vmem:[#allocation2 + $0xc0] sm:$0xff] %v661_v30  ;;  %698 = vst [vmem:[#allocation2 + $0xc8] sm:$0xff] %v3919_v21  ;;  %v621_v35 = vrot.slane %v571_v18, 7  ;;  %v3981_v61 = vld [vmem:[#allocation2 + $0x81] sm:$0xff]  ;;  %v3985_v2 = vld [vmem:[#allocation2 + $0x91] sm:$0xff] }
 0x1e7   : > { %1233 = vmatmul.mubr.f32.gmra.mrb[32].mxu0 %v3911_v6  ;;  %2867 = vmatprep.subr.bf16.mxu0 %v2866_v3  ;;  %v3931_v42 = vrot.slane %v570_v31, 7  ;;  %v3987_v3 = vld [vmem:[#allocation2 + $0x82] sm:$0xff]  ;;  %v3994_v4 = vld [vmem:[#allocation2 + $0x92] sm:$0xff] }
 0x1e8   : > { %3095 = vmatmul.mubr.msk.f32.gmra.mrb[12].mxu1 %vm3765_vm1, %v3788_v0  ;;  %1237 = vmatprep.mubr.f32.mxu0 %v3821_v36  ;;  %v672_v44 = vsel %vm592_vm0, %v621_v35, 0.0  ;;  %v4001_v5 = vld [vmem:[#allocation2 + $0x99] sm:$0xff]  ;;  %v980_v18 = vld [vmem:[#allocation9 + $0x418] sm:$0xff]  ;;  %v981_v30 = vld [vmem:[#allocation9 + $0x420] sm:$0xff] }
 0x1e9   : > { %1092 = vmatprep.mubr.f32.mxu1 %v3928_v38  ;;  %2837 = vmatpush3.bf16.msra.mxu1 %v2836_v16  ;;  %702 = vst [vmem:[#allocation2 + $0xe8] sm:$0x3] %v672_v44  ;;  %v3943_v51 = vsel %vm592_vm0, %v3931_v42, %v621_v35  ;;  %v662_v53 = vsel %vm592_vm0, 0.0, %v3931_v42  ;;  %v4005_v8 = vld [vmem:[#allocation2 + $0xa9] sm:$0xff]  ;;  %v4021_v15 = vld [vmem:[#allocation2 + $0xb1] sm:$0xff]  ;;  %v2882_v27 = vpack.c.bf16 %v982_v22, %v981_v30  ;;  %v1740_v35 = vld [vmem:[#allocation11 + $0x30] sm:$0xff] }
 0x1ea   : > { %2839 = vmatprep.subr.bf16.mxu1 %v2838_v17  ;;  %2869 = vmatpush3.bf16.msra.mxu0 %v2868_v28  ;;  %700 = vst [vmem:[#allocation2 + $0xd8] sm:$0xff] %v662_v53  ;;  %701 = vst [vmem:[#allocation2 + $0xe0] sm:$0xff] %v3943_v51  ;;  %v4014_v13 = vld [vmem:[#allocation2 + $0xaa] sm:$0xff]  ;;  %v4025_v16 = vld [vmem:[#allocation2 + $0xb2] sm:$0xff] }
 0x1eb   : > { %1238 = vmatmul.mubr.f32.gmra.mrb[34].mxu0 %v3937_v46  ;;  %2871 = vmatprep.subr.bf16.mxu0 %v2870_v34  ;;  %v979_v17 = vld [vmem:[#allocation9 + $0x410] sm:$0xff]  ;;  %v984_v28 = vld [vmem:[#allocation9 + $0x438] sm:$0xff]  ;;  %v990_v31 = vld [vmem:[#allocation9 + $0x468] sm:$0xff] }
 0x1ec   : > { %1093 = vmatmul.mubr.f32.gmra.mrb[14].mxu1 %v3798_v12  ;;  %3097 = vmatprep.mubr.msk.f32.mxu0 %vm3765_vm1, %v3837_v50  ;;  %v2878_v19 = vpack.c.bf16 %v980_v18, %v979_v17  ;;  %v988_v29 = vld [vmem:[#allocation9 + $0x458] sm:$0xff]  ;;  %v1739_v34 = vld [vmem:[#allocation11 + $0x28] sm:$0xff] }
 0x1ed   : > { %1097 = vmatprep.mubr.f32.mxu1 %v3935_v45  ;;  %2841 = vmatpush3.bf16.msra.mxu1 %v2840_v43  ;;  %v992_v32 = vld [vmem:[#allocation9 + $0x478] sm:$0xff]  ;;  %v2914_v20 = vpack.c.bf16 %v1739_v34, %v1738_v33  ;;  %v1742_v43 = vld [vmem:[#allocation11 + $0x40] sm:$0xff]  ;;  %v1743_v44 = vld [vmem:[#allocation11 + $0x48] sm:$0xff] }
 0x1ee   : > { %2875 = vmatprep.subr.bf16.mxu1 %v3939_v47  ;;  %2873 = vmatpush3.bf16.msra.mxu0 %v2872_v48  ;;  %v1747_v53 = vld [vmem:[#allocation11 + $0x68] sm:$0xff] }
 0x1ef   : > { %1243 = vmatmul.mubr.f32.gmra.mrb[36].mxu0 %v3953_v54 }
 0x1f0   : > { %3099 = vmatmul.mubr.msk.f32.gmra.mrb[16].mxu1 %vm3765_vm1, %v3813_v26  ;;  %1247 = vmatprep.mubr.f32.mxu0 %v3851_v1 }
 0x1f1   : > { %1102 = vmatprep.mubr.f32.mxu1 %v3961_v55  ;;  %v847_v37 = vld [vmem:[#allocation2 + $0xda] sm:$0xff] }
 0x1f3   : > { %1248 = vmatmul.mubr.f32.gmra.mrb[38].mxu0 %v3967_v59 }
 0x1f4   : > { %1103 = vmatmul.mubr.f32.gmra.mrb[18].mxu1 %v3821_v36  ;;  %3101 = vmatprep.mubr.msk.f32.mxu0 %vm3765_vm1, %v3865_v11 }
 0x1f5   : > { %1107 = vmatprep.mubr.f32.mxu1 %v3965_v24 }
 0x1f7   : > { %1253 = vmatmul.mubr.f32.gmra.mrb[40].mxu0 %v3974_v60 }
 0x1f8   : > { %3103 = vmatmul.mubr.msk.f32.gmra.mrb[20].mxu1 %vm3765_vm1, %v3837_v50  ;;  %1257 = vmatprep.mubr.f32.mxu0 %v3873_v23 }
 0x1f9   : > { %1112 = vmatprep.mubr.f32.mxu1 %v3981_v61 }
 0x1fb   : > { %1258 = vmatmul.mubr.f32.gmra.mrb[42].mxu0 %v3987_v3 }
 0x1fc   : > { %1113 = vmatmul.mubr.f32.gmra.mrb[22].mxu1 %v3851_v1  ;;  %3105 = vmatprep.mubr.msk.f32.mxu0 %vm3765_vm1, %v3889_v41 }
 0x1fd   : > { %1117 = vmatprep.mubr.f32.mxu1 %v3985_v2 }
 0x1ff   : > { %1263 = vmatmul.mubr.f32.gmra.mrb[44].mxu0 %v3994_v4 }
 0x200   : > { %3107 = vmatmul.mubr.msk.f32.gmra.mrb[24].mxu1 %vm3765_vm1, %v3865_v11  ;;  %1267 = vmatprep.mubr.f32.mxu0 %v3901_v58 }
 0x201   : > { %1122 = vmatprep.mubr.f32.mxu1 %v4001_v5 }
 0x203   : > { %1268 = vmatmul.mubr.f32.gmra.mrb[46].mxu0 %v4007_v9 }
 0x204   : > { %1123 = vmatmul.mubr.f32.gmra.mrb[26].mxu1 %v3873_v23  ;;  %3109 = vmatprep.mubr.msk.f32.mxu0 %vm3765_vm1, %v3913_v7 }
 0x205   : > { %1127 = vmatprep.mubr.f32.mxu1 %v4005_v8 }
 0x207   : > { %1273 = vmatmul.mubr.f32.gmra.mrb[48].mxu0 %v4014_v13 }
 0x208   : > { %3111 = vmatmul.mubr.msk.f32.gmra.mrb[28].mxu1 %vm3765_vm1, %v3889_v41  ;;  %1277 = vmatprep.mubr.f32.mxu0 %v3919_v21 }
 0x209   : > { %1132 = vmatprep.mubr.f32.mxu1 %v4021_v15 }
 0x20b   : > { %1278 = vmatmul.mubr.f32.gmra.mrb[50].mxu0 %v4025_v16 }
 0x20c   : > { %1133 = vmatmul.mubr.f32.gmra.mrb[30].mxu1 %v3901_v58  ;;  %1492 = vmatprep.mubr.f32.mxu0 %v3845_v62 }
 0x20d   : > { %1347 = vmatprep.mubr.f32.mxu1 %v3811_v25  ;;  %v983_v25 = vld [vmem:[#allocation9 + $0x430] sm:$0xff] }
 0x20f   : > { %3113 = vmatmul.mubr.msk.f32.vlgmr.msra.gmra.mrb[52].mxu0 %vm3765_vm1, %v3772_v40  ;;  %v2886_v40 = vpack.c.bf16 %v984_v28, %v983_v25 }
 0x210   : > { %1348 = vmatmul.mubr.f32.vlgmr.msra.gmra.mrb[32].mxu1 %v3802_v14  ;;  %1497 = vmatprep.mubr.f32.mxu0 %v3886_v39  ;;  %v985_v14 = vld [vmem:[#allocation9 + $0x440] sm:$0xff] }
 0x211   : > { %2877 = vmatpush3.bf16.msra.mxu1 %v3939_v47  ;;  %1352 = vmatprep.mubr.f32.mxu1 %v3847_v63  ;;  %v986_v63 = vld [vmem:[#allocation9 + $0x448] sm:$0xff]  ;;  %v1745_v47 = vld [vmem:[#allocation11 + $0x58] sm:$0xff] }
 0x212   : > { %2879 = vmatprep.subr.bf16.mxu1 %v2878_v19 }
 0x213   : > { %1498 = vmatmul.mubr.f32.gmra.mrb[54].mxu0 %v3779_v52  ;;  %v2890_v52 = vpack.c.bf16 %v986_v63, %v985_v14 }
 0x214   : > { %1353 = vmatmul.mubr.f32.gmra.mrb[34].mxu1 %v3834_v49  ;;  %1502 = vmatprep.mubr.f32.mxu0 %v3895_v56  ;;  %v987_v49 = vld [vmem:[#allocation9 + $0x450] sm:$0xff] }
 0x215   : > { %1357 = vmatprep.mubr.f32.mxu1 %v3863_v10  ;;  %2881 = vmatpush3.bf16.msra.mxu1 %v2878_v19 }
 0x216   : > { %2883 = vmatprep.subr.bf16.mxu1 %v2882_v27 }
 0x217   : > { %3115 = vmatmul.mubr.msk.f32.gmra.mrb[56].mxu0 %vm3765_vm1, %v3788_v0  ;;  %v2894_v0 = vpack.c.bf16 %v988_v29, %v987_v49 }
 0x218   : > { %1358 = vmatmul.mubr.f32.gmra.mrb[36].mxu1 %v3845_v62  ;;  %1507 = vmatprep.mubr.f32.mxu0 %v3928_v38  ;;  %v989_v62 = vld [vmem:[#allocation9 + $0x460] sm:$0xff] }
 0x219   : > { %1362 = vmatprep.mubr.f32.mxu1 %v3897_v57  ;;  %2885 = vmatpush3.bf16.msra.mxu1 %v2882_v27 }
 0x21a   : > { %2887 = vmatprep.subr.bf16.mxu1 %v2886_v40 }
 0x21b   : > { %1508 = vmatmul.mubr.f32.gmra.mrb[58].mxu0 %v3798_v12  ;;  %v2898_v12 = vpack.c.bf16 %v990_v31, %v989_v62 }
 0x21c   : > { %1363 = vmatmul.mubr.f32.gmra.mrb[38].mxu1 %v3886_v39  ;;  %1512 = vmatprep.mubr.f32.mxu0 %v3935_v45  ;;  %v991_v39 = vld [vmem:[#allocation9 + $0x470] sm:$0xff] }
 0x21d   : > { %1367 = vmatprep.mubr.f32.mxu1 %v3911_v6  ;;  %2889 = vmatpush3.bf16.msra.mxu1 %v2886_v40 }
 0x21e   : > { %2891 = vmatprep.subr.bf16.mxu1 %v2890_v52 }
 0x21f   : > { %3117 = vmatmul.mubr.msk.f32.gmra.mrb[60].mxu0 %vm3765_vm1, %v3813_v26  ;;  %v2902_v26 = vpack.c.bf16 %v992_v32, %v991_v39 }
 0x220   : > { %1368 = vmatmul.mubr.f32.gmra.mrb[40].mxu1 %v3895_v56  ;;  %1517 = vmatprep.mubr.f32.mxu0 %v3961_v55  ;;  %v1734_v56 = vld [vmem:[#allocation11] sm:$0xff] }
 0x221   : > { %1372 = vmatprep.mubr.f32.mxu1 %v3937_v46  ;;  %2893 = vmatpush3.bf16.msra.mxu1 %v2890_v52 }
 0x222   : > { %2895 = vmatprep.subr.bf16.mxu1 %v2894_v0 }
 0x223   : > { %1518 = vmatmul.mubr.f32.gmra.mrb[62].mxu0 %v3821_v36  ;;  %v829_v36 = vld [vmem:[#allocation2 + $0xc1] sm:$0xff] }
 0x224   : > { %1373 = vmatmul.mubr.f32.gmra.mrb[42].mxu1 %v3928_v38  ;;  %1522 = vmatprep.mubr.f32.mxu0 %v3965_v24  ;;  %v1741_v38 = vld [vmem:[#allocation11 + $0x38] sm:$0xff] }
 0x225   : > { %1377 = vmatprep.mubr.f32.mxu1 %v3953_v54  ;;  %2897 = vmatpush3.bf16.msra.mxu1 %v2894_v0 }
 0x226   : > { %2899 = vmatprep.subr.bf16.mxu1 %v2898_v12 }
 0x227   : > { %3119 = vmatmul.mubr.msk.f32.gmra.mrb[64].mxu0 %vm3765_vm1, %v3837_v50  ;;  %v830_v50 = vld [vmem:[#allocation2 + $0xc9] sm:$0xff] }
 0x228   : > { %1378 = vmatmul.mubr.f32.gmra.mrb[44].mxu1 %v3935_v45  ;;  %1527 = vmatprep.mubr.f32.mxu0 %v3981_v61  ;;  %v2922_v45 = vpack.c.bf16 %v1743_v44, %v1742_v43 }
 0x229   : > { %1382 = vmatprep.mubr.f32.mxu1 %v3967_v59  ;;  %2901 = vmatpush3.bf16.msra.mxu1 %v2898_v12 }
 0x22a   : > { %2903 = vmatprep.subr.bf16.mxu1 %v2902_v26 }
 0x22b   : > { %1528 = vmatmul.mubr.f32.gmra.mrb[66].mxu0 %v3851_v1  ;;  %v831_v1 = vld [vmem:[#allocation2 + $0xd9] sm:$0xff] }
 0x22c   : > { %1383 = vmatmul.mubr.f32.gmra.mrb[46].mxu1 %v3961_v55  ;;  %1532 = vmatprep.mubr.f32.mxu0 %v3985_v2 }
 0x22d   : > { %1387 = vmatprep.mubr.f32.mxu1 %v3974_v60  ;;  %2905 = vmatpush3.bf16.msra.mxu1 %v2902_v26 }
 0x22f   : > { %3121 = vmatmul.mubr.msk.f32.gmra.mrb[68].mxu0 %vm3765_vm1, %v3865_v11  ;;  %v798_v11 = vld [vmem:[#allocation2 + $0xc2] sm:$0xff] }
 0x230   : > { %1388 = vmatmul.mubr.f32.gmra.mrb[48].mxu1 %v3965_v24  ;;  %1537 = vmatprep.mubr.f32.mxu0 %v4001_v5 }
 0x231   : > { %1392 = vmatprep.mubr.f32.mxu1 %v3987_v3 }
 0x233   : > { %1538 = vmatmul.mubr.f32.gmra.mrb[70].mxu0 %v3873_v23  ;;  %v832_v23 = vld [vmem:[#allocation2 + $0xe1] sm:$0xff] }
 0x234   : > { %1393 = vmatmul.mubr.f32.gmra.mrb[50].mxu1 %v3981_v61  ;;  %1542 = vmatprep.mubr.f32.mxu0 %v4005_v8 }
 0x235   : > { %1397 = vmatprep.mubr.f32.mxu1 %v3994_v4 }
 0x237   : > { %3123 = vmatmul.mubr.msk.f32.gmra.mrb[72].mxu0 %vm3765_vm1, %v3889_v41  ;;  %v799_v41 = vld [vmem:[#allocation2 + $0xca] sm:$0xff] }
 0x238   : > { %1398 = vmatmul.mubr.f32.gmra.mrb[52].mxu1 %v3985_v2  ;;  %1547 = vmatprep.mubr.f32.mxu0 %v4021_v15  ;;  %v1748_v2 = vld [vmem:[#allocation11 + $0x70] sm:$0xff] }
 0x239   : > { %1402 = vmatprep.mubr.f32.mxu1 %v4007_v9 }
 0x23b   : > { %1548 = vmatmul.mubr.f32.gmra.mrb[74].mxu0 %v3901_v58 }
 0x23c   : > { %1403 = vmatmul.mubr.f32.gmra.mrb[54].mxu1 %v4001_v5  ;;  %1552 = vmatprep.mubr.f32.mxu0 %v829_v36 }
 0x23d   : > { %1407 = vmatprep.mubr.f32.mxu1 %v4014_v13 }
 0x23f   : > { %3125 = vmatmul.mubr.msk.f32.gmra.mrb[76].mxu0 %vm3765_vm1, %v3913_v7  ;;  %v1737_v7 = vld [vmem:[#allocation11 + $0x18] sm:$0xff] }
 0x240   : > { %1408 = vmatmul.mubr.f32.gmra.mrb[56].mxu1 %v4005_v8  ;;  %1557 = vmatprep.mubr.f32.mxu0 %v830_v50 }
 0x241   : > { %1412 = vmatprep.mubr.f32.mxu1 %v4025_v16 }
 0x243   : > { %1558 = vmatmul.mubr.f32.gmra.mrb[78].mxu0 %v3919_v21 }
 0x244   : > { %1413 = vmatmul.mubr.f32.gmra.mrb[58].mxu1 %v4021_v15  ;;  %1562 = vmatprep.mubr.f32.mxu0 %v831_v1 }
 0x245   : > { %1417 = vmatprep.mubr.f32.mxu1 %v798_v11 }
 0x247   : > { %3127 = vmatmul.mubr.msk.f32.gmra.mrb[80].mxu0 %vm3765_vm1, %v3931_v42  ;;  %v2918_v42 = vpack.c.bf16 %v1741_v38, %v1740_v35 }
 0x248   : > { %1418 = vmatmul.mubr.f32.gmra.mrb[60].mxu1 %v829_v36  ;;  %1567 = vmatprep.mubr.f32.mxu0 %v832_v23 }
 0x249   : > { %1422 = vmatprep.mubr.f32.mxu1 %v799_v41 }
 0x24b   : > { %1568 = vmatmul.mubr.f32.gmra.mrb[82].mxu0 %v3943_v51  ;;  %v1746_v51 = vld [vmem:[#allocation11 + $0x60] sm:$0xff] }
 0x24c   : > { %1423 = vmatmul.mubr.f32.gmra.mrb[62].mxu1 %v830_v50 }
 0x24d   : > { %2634 = vmatprep.mubr.f32.mxu1 %v3863_v10  ;;  %v848_v10 = vld [vmem:[#allocation2 + $0xe2] sm:$0xff] }
 0x250   : > { %2635 = vmatmul.mubr.f32.vlgmr.msra.gmra.mrb[64].mxu1 %v3897_v57  ;;  %v1735_v57 = vld [vmem:[#allocation11 + $0x8] sm:$0xff] }
 0x251   : > { %2637 = vmatprep.mubr.f32.mxu1 %v3911_v6  ;;  %v2906_v58 = vpack.c.bf16 %v1735_v57, %v1734_v56  ;;  %v1736_v6 = vld [vmem:[#allocation11 + $0x10] sm:$0xff] }
 0x252   : > { %v2910_v21 = vpack.c.bf16 %v1737_v7, %v1736_v6 }
 0x253   : > { %2907 = vmatprep.subr.bf16.mxu0 %v2906_v58  ;;  %2938 = vmatprep.subr.bf16.mxu1 %v2906_v58 }
 0x254   : > { %2638 = vmatmul.mubr.f32.gmra.mrb[66].mxu1 %v3937_v46  ;;  %2909 = vmatpush3.bf16.msra.mxu0 %v2906_v58  ;;  %v1744_v46 = vld [vmem:[#allocation11 + $0x50] sm:$0xff] }
 0x255   : > { %2640 = vmatprep.mubr.f32.mxu1 %v3953_v54  ;;  %2946 = vmatpush3.bf16.msra.mxu1 %v2906_v58  ;;  %v2926_v48 = vpack.c.bf16 %v1745_v47, %v1744_v46  ;;  %v2930_v54 = vpack.c.bf16 %v1747_v53, %v1746_v51 }
 0x256   : > { %2911 = vmatprep.subr.bf16.mxu0 %v2910_v21  ;;  %2939 = vmatprep.subr.bf16.mxu1 %v2910_v21 }
 0x258   : > { %2641 = vmatmul.mubr.f32.gmra.mrb[68].mxu1 %v3967_v59  ;;  %2913 = vmatpush3.bf16.msra.mxu0 %v2910_v21 }
 0x259   : > { %2643 = vmatprep.mubr.f32.mxu1 %v3974_v60  ;;  %2947 = vmatpush3.bf16.msra.mxu1 %v2910_v21 }
 0x25a   : > { %2915 = vmatprep.subr.bf16.mxu0 %v2914_v20  ;;  %2940 = vmatprep.subr.bf16.mxu1 %v2914_v20 }
 0x25c   : > { %2644 = vmatmul.mubr.f32.gmra.mrb[70].mxu1 %v3987_v3  ;;  %2917 = vmatpush3.bf16.msra.mxu0 %v2914_v20  ;;  %v1749_v3 = vld [vmem:[#allocation11 + $0x78] sm:$0xff] }
 0x25d   : > { %2646 = vmatprep.mubr.f32.mxu1 %v3994_v4  ;;  %2948 = vmatpush3.bf16.msra.mxu1 %v2914_v20  ;;  %v2934_v5 = vpack.c.bf16 %v1749_v3, %v1748_v2 }
 0x25e   : > { %2919 = vmatprep.subr.bf16.mxu0 %v2918_v42  ;;  %2941 = vmatprep.subr.bf16.mxu1 %v2918_v42 }
 0x260   : > { %2647 = vmatmul.mubr.f32.gmra.mrb[72].mxu1 %v4007_v9  ;;  %2921 = vmatpush3.bf16.msra.mxu0 %v2918_v42 }
 0x261   : > { %2649 = vmatprep.mubr.f32.mxu1 %v4014_v13  ;;  %2949 = vmatpush3.bf16.msra.mxu1 %v2918_v42 }
 0x262   : > { %2923 = vmatprep.subr.bf16.mxu0 %v2922_v45  ;;  %2942 = vmatprep.subr.bf16.mxu1 %v2922_v45 }
 0x264   : > { %2650 = vmatmul.mubr.f32.gmra.mrb[74].mxu1 %v4025_v16  ;;  %2925 = vmatpush3.bf16.msra.mxu0 %v2922_v45 }
 0x265   : > { %2652 = vmatprep.mubr.f32.mxu1 %v798_v11  ;;  %2950 = vmatpush3.bf16.msra.mxu1 %v2922_v45 }
 0x266   : > { %2927 = vmatprep.subr.bf16.mxu0 %v2926_v48  ;;  %2943 = vmatprep.subr.bf16.mxu1 %v2926_v48 }
 0x268   : > { %2653 = vmatmul.mubr.f32.gmra.mrb[76].mxu1 %v799_v41  ;;  %2929 = vmatpush3.bf16.msra.mxu0 %v2926_v48 }
 0x269   : > { %2655 = vmatprep.mubr.f32.mxu1 %v847_v37  ;;  %2951 = vmatpush3.bf16.msra.mxu1 %v2926_v48 }
 0x26a   : > { %2931 = vmatprep.subr.bf16.mxu0 %v2930_v54  ;;  %2944 = vmatprep.subr.bf16.mxu1 %v2930_v54 }
 0x26c   : > { %2656 = vmatmul.mubr.f32.gmra.mrb[78].mxu1 %v848_v10  ;;  %2933 = vmatpush3.bf16.msra.mxu0 %v2930_v54 }
 0x26d   : > { %2952 = vmatpush3.bf16.msra.mxu1 %v2930_v54  ;;  %2935 = vmatprep.subr.bf16.mxu0 %v2934_v5 }
 0x26e   : > { %2945 = vmatprep.subr.bf16.mxu1 %v2934_v5 }
 0x270   : > { %2937 = vmatpush3.bf16.msra.mxu0 %v2934_v5 }
 0x271   : > { %2953 = vmatpush3.bf16.msra.mxu1 %v2934_v5 }
 0x2a2   : > { %v2268_v55 = vpop.f32.mrb[20].mxu0  ;;  %v2188_v24 = vpop.f32.mrb[0].mxu1 }
 0x2a3   : > { %v2269_v59 = vpop.f32.mrb[21].mxu0  ;;  %v2189_v60 = vpop.f32.mrb[1].mxu1 }
 0x2a4   : > { %v2270_v61 = vadd.f32 %v2269_v59, %v2268_v55  ;;  %v2190_v4 = vadd.f32 %v2189_v60, %v2188_v24 }
 0x2a6   : > { %v2271_v8 = vpop.f32.mrb[22].mxu0  ;;  %v4114_v13 = vadd.f32 %v2270_v61, %v2190_v4 }
 0x2a7   : > { %v2191_v9 = vpop.f32.mrb[2].mxu1  ;;  %v2272_v15 = vpop.f32.mrb[23].mxu0 }
 0x2a8   : > { %v2192_v16 = vpop.f32.mrb[3].mxu1  ;;  %v2273_v17 = vadd.f32 %v2272_v15, %v2271_v8 }
 0x2a9   : > { %v2193_v18 = vadd.f32 %v2192_v16, %v2191_v9 }
 0x2aa   : > { %v2274_v19 = vpop.f32.mrb[24].mxu0 }
 0x2ab   : > { %v2194_v30 = vpop.f32.mrb[4].mxu1  ;;  %v4116_v22 = vadd.f32 %v2273_v17, %v2193_v18  ;;  %v2275_v27 = vpop.f32.mrb[25].mxu0 }
 0x2ac   : > { %v2195_v25 = vpop.f32.mrb[5].mxu1  ;;  %v2276_v28 = vadd.f32 %v2275_v27, %v2274_v19 }
 0x2ad   : > { %v2196_v40 = vadd.f32 %v2195_v25, %v2194_v30 }
 0x2ae   : > { %v2277_v14 = vpop.f32.mrb[26].mxu0 }
 0x2af   : > { %v2197_v63 = vpop.f32.mrb[6].mxu1  ;;  %v4118_v52 = vadd.f32 %v2276_v28, %v2196_v40  ;;  %v2278_v49 = vpop.f32.mrb[27].mxu0 }
 0x2b0   : > { %v2198_v29 = vpop.f32.mrb[7].mxu1  ;;  %v2279_v0 = vadd.f32 %v2278_v49, %v2277_v14 }
 0x2b1   : > { %v2199_v62 = vadd.f32 %v2198_v29, %v2197_v63 }
 0x2b2   : > { %v2280_v31 = vpop.f32.mrb[28].mxu0 }
 0x2b3   : > { %v2200_v12 = vpop.f32.mrb[8].mxu1  ;;  %v4120_v39 = vadd.f32 %v2279_v0, %v2199_v62  ;;  %v2281_v32 = vpop.f32.mrb[29].mxu0 }
 0x2b4   : > { %v2201_v26 = vpop.f32.mrb[9].mxu1  ;;  %v2282_v36 = vadd.f32 %v2281_v32, %v2280_v31 }
 0x2b5   : > { %v2202_v50 = vadd.f32 %v2201_v26, %v2200_v12 }
 0x2b6   : > { %v2283_v1 = vpop.f32.mrb[30].mxu0 }
 0x2b7   : > { %v2203_v11 = vpop.f32.mrb[10].mxu1  ;;  %v4122_v23 = vadd.f32 %v2282_v36, %v2202_v50  ;;  %v2284_v41 = vpop.f32.mrb[31].mxu0 }
 0x2b8   : > { %v2204_v37 = vpop.f32.mrb[11].mxu1  ;;  %v2285_v10 = vadd.f32 %v2284_v41, %v2283_v1 }
 0x2b9   : > { %v2205_v56 = vadd.f32 %v2204_v37, %v2203_v11 }
 0x2ba   : > { %v2286_v57 = vpop.f32.mrb[32].mxu0 }
 0x2bb   : > { %v2206_v58 = vpop.f32.mrb[12].mxu1  ;;  %v4124_v6 = vadd.f32 %v2285_v10, %v2205_v56  ;;  %v2287_v7 = vpop.f32.mrb[33].mxu0 }
 0x2bc   : > { %v2207_v21 = vpop.f32.mrb[13].mxu1  ;;  %v2288_v33 = vadd.f32 %v2287_v7, %v2286_v57 }
 0x2bd   : > { %v2208_v34 = vadd.f32 %v2207_v21, %v2206_v58 }
 0x2be   : > { %v2289_v20 = vpop.f32.mrb[34].mxu0 }
 0x2bf   : > { %v2209_v35 = vpop.f32.mrb[14].mxu1  ;;  %v4126_v38 = vadd.f32 %v2288_v33, %v2208_v34  ;;  %v2290_v42 = vpop.f32.mrb[35].mxu0 }
 0x2c0   : > { %v2210_v43 = vpop.f32.mrb[15].mxu1  ;;  %v2291_v44 = vadd.f32 %v2290_v42, %v2289_v20 }
 0x2c1   : > { %v2211_v45 = vadd.f32 %v2210_v43, %v2209_v35 }
 0x2c2   : > { %v2292_v46 = vpop.f32.mrb[36].mxu0 }
 0x2c3   : > { %v2212_v47 = vpop.f32.mrb[16].mxu1  ;;  %v4128_v48 = vadd.f32 %v2291_v44, %v2211_v45  ;;  %v2293_v51 = vpop.f32.mrb[37].mxu0 }
 0x2c4   : > { %v2213_v53 = vpop.f32.mrb[17].mxu1  ;;  %v2294_v54 = vadd.f32 %v2293_v51, %v2292_v46 }
 0x2c5   : > { %v2214_v55 = vadd.f32 %v2213_v53, %v2212_v47 }
 0x2c6   : > { %v2295_v24 = vpop.f32.mrb[38].mxu0 }
 0x2c7   : > { %v2215_v59 = vpop.f32.mrb[18].mxu1  ;;  %v4130_v60 = vadd.f32 %v2294_v54, %v2214_v55  ;;  %v2296_v61 = vpop.f32.mrb[39].mxu0 }
 0x2c8   : > { %v2216_v2 = vpop.f32.mrb[19].mxu1  ;;  %v2297_v3 = vadd.f32 %v2296_v61, %v2295_v24 }
 0x2c9   : > { %v2217_v4 = vadd.f32 %v2216_v2, %v2215_v59 }
 0x2ca   : > { %v2298_v5 = vpop.f32.mrb[40].mxu0 }
 0x2cb   : > { %v2218_v8 = vpop.f32.mrb[20].mxu1  ;;  %v4132_v9 = vadd.f32 %v2297_v3, %v2217_v4  ;;  %v2299_v15 = vpop.f32.mrb[41].mxu0 }
 0x2cc   : > { %v2219_v16 = vpop.f32.mrb[21].mxu1  ;;  %v2300_v17 = vadd.f32 %v2299_v15, %v2298_v5 }
 0x2cd   : > { %v2220_v18 = vadd.f32 %v2219_v16, %v2218_v8 }
 0x2ce   : > { %v2301_v19 = vpop.f32.mrb[42].mxu0 }
 0x2cf   : > { %v2221_v30 = vpop.f32.mrb[22].mxu1  ;;  %v4134_v27 = vadd.f32 %v2300_v17, %v2220_v18  ;;  %v2302_v25 = vpop.f32.mrb[43].mxu0 }
 0x2d0   : > { %v2222_v28 = vpop.f32.mrb[23].mxu1  ;;  %v2303_v40 = vadd.f32 %v2302_v25, %v2301_v19 }
 0x2d1   : > { %v2223_v14 = vadd.f32 %v2222_v28, %v2221_v30 }
 0x2d2   : > { %v2304_v63 = vpop.f32.mrb[44].mxu0 }
 0x2d3   : > { %v2224_v49 = vpop.f32.mrb[24].mxu1  ;;  %v4136_v29 = vadd.f32 %v2303_v40, %v2223_v14  ;;  %v2305_v0 = vpop.f32.mrb[45].mxu0 }
 0x2d4   : > { %v2225_v62 = vpop.f32.mrb[25].mxu1  ;;  %v2306_v31 = vadd.f32 %v2305_v0, %v2304_v63 }
 0x2d5   : > { %v2226_v12 = vadd.f32 %v2225_v62, %v2224_v49 }
 0x2d6   : > { %v2307_v32 = vpop.f32.mrb[46].mxu0 }
 0x2d7   : > { %v2227_v26 = vpop.f32.mrb[26].mxu1  ;;  %v4138_v36 = vadd.f32 %v2306_v31, %v2226_v12  ;;  %v2308_v50 = vpop.f32.mrb[47].mxu0 }
 0x2d8   : > { %v2228_v1 = vpop.f32.mrb[27].mxu1  ;;  %v2309_v11 = vadd.f32 %v2308_v50, %v2307_v32 }
 0x2d9   : > { %v2229_v41 = vadd.f32 %v2228_v1, %v2227_v26 }
 0x2da   : > { %v2310_v37 = vpop.f32.mrb[48].mxu0 }
 0x2db   : > { %v2230_v10 = vpop.f32.mrb[28].mxu1  ;;  %v4140_v56 = vadd.f32 %v2309_v11, %v2229_v41  ;;  %v2311_v57 = vpop.f32.mrb[49].mxu0 }
 0x2dc   : > { %v2231_v58 = vpop.f32.mrb[29].mxu1  ;;  %v2312_v7 = vadd.f32 %v2311_v57, %v2310_v37 }
 0x2dd   : > { %v2232_v21 = vadd.f32 %v2231_v58, %v2230_v10 }
 0x2de   : > { %v2313_v33 = vpop.f32.mrb[50].mxu0 }
 0x2df   : > { %v2233_v34 = vpop.f32.mrb[30].mxu1  ;;  %v4142_v20 = vadd.f32 %v2312_v7, %v2232_v21  ;;  %v2314_v35 = vpop.f32.mrb[51].mxu0 }
 0x2e0   : > { %v2234_v42 = vpop.f32.mrb[31].mxu1  ;;  %v2315_v43 = vadd.f32 %v2314_v35, %v2313_v33 }
 0x2e1   : > { %v2235_v44 = vadd.f32 %v2234_v42, %v2233_v34 }
 0x2e2   : > { %v2428_v45 = vpop.f32.mrb[52].mxu0 }
 0x2e3   : > { %v2348_v46 = vpop.f32.mrb[32].mxu1  ;;  %v4144_v47 = vadd.f32 %v2315_v43, %v2235_v44  ;;  %v2429_v51 = vpop.f32.mrb[53].mxu0 }
 0x2e4   : > { %v2349_v53 = vpop.f32.mrb[33].mxu1  ;;  %v2430_v54 = vadd.f32 %v2429_v51, %v2428_v45 }
 0x2e5   : > { %v2350_v55 = vadd.f32 %v2349_v53, %v2348_v46 }
 0x2e6   : > { %v2431_v24 = vpop.f32.mrb[54].mxu0 }
 0x2e7   : > { %v1350_v59 = vadd.f32 %v2350_v55, %v4114_v13  ;;  %v2351_v61 = vpop.f32.mrb[34].mxu1  ;;  %v2432_v2 = vpop.f32.mrb[55].mxu0 }
 0x2e8   : > { %v2352_v3 = vpop.f32.mrb[35].mxu1  ;;  %v2433_v4 = vadd.f32 %v2432_v2, %v2431_v24 }
 0x2e9   : > { %v2353_v5 = vadd.f32 %v2352_v3, %v2351_v61  ;;  %v4147_v8 = vadd.f32 %v2430_v54, %v1350_v59 }
 0x2ea   : > { %v2434_v15 = vpop.f32.mrb[56].mxu0 }
 0x2eb   : > { %v1355_v16 = vadd.f32 %v2353_v5, %v4116_v22  ;;  %v2354_v17 = vpop.f32.mrb[36].mxu1  ;;  %v2435_v18 = vpop.f32.mrb[57].mxu0 }
 0x2ec   : > { %v2355_v19 = vpop.f32.mrb[37].mxu1  ;;  %v2436_v30 = vadd.f32 %v2435_v18, %v2434_v15 }
 0x2ed   : > { %v2356_v25 = vadd.f32 %v2355_v19, %v2354_v17  ;;  %v4150_v28 = vadd.f32 %v2433_v4, %v1355_v16 }
 0x2ee   : > { %v2437_v40 = vpop.f32.mrb[58].mxu0 }
 0x2ef   : > { %v1360_v13 = vadd.f32 %v2356_v25, %v4118_v52  ;;  %v2357_v14 = vpop.f32.mrb[38].mxu1  ;;  %v2438_v63 = vpop.f32.mrb[59].mxu0 }
 0x2f0   : > { %v2358_v49 = vpop.f32.mrb[39].mxu1  ;;  %v2439_v0 = vadd.f32 %v2438_v63, %v2437_v40 }
 0x2f1   : > { %v2359_v62 = vadd.f32 %v2358_v49, %v2357_v14  ;;  %v4153_v31 = vadd.f32 %v2436_v30, %v1360_v13 }
 0x2f2   : > { %v2440_v12 = vpop.f32.mrb[60].mxu0 }
 0x2f3   : > { %v1365_v22 = vadd.f32 %v2359_v62, %v4120_v39  ;;  %v2360_v32 = vpop.f32.mrb[40].mxu1  ;;  %v2441_v26 = vpop.f32.mrb[61].mxu0 }
 0x2f4   : > { %v2361_v50 = vpop.f32.mrb[41].mxu1  ;;  %v2442_v1 = vadd.f32 %v2441_v26, %v2440_v12 }
 0x2f5   : > { %v2362_v11 = vadd.f32 %v2361_v50, %v2360_v32  ;;  %v4156_v41 = vadd.f32 %v2439_v0, %v1365_v22 }
 0x2f6   : > { %v2443_v37 = vpop.f32.mrb[62].mxu0 }
 0x2f7   : > { %v1370_v52 = vadd.f32 %v2362_v11, %v4122_v23  ;;  %v2363_v10 = vpop.f32.mrb[42].mxu1  ;;  %v2444_v57 = vpop.f32.mrb[63].mxu0 }
 0x2f8   : > { %v2364_v58 = vpop.f32.mrb[43].mxu1  ;;  %v2445_v7 = vadd.f32 %v2444_v57, %v2443_v37 }
 0x2f9   : > { %v2365_v21 = vadd.f32 %v2364_v58, %v2363_v10  ;;  %v4159_v33 = vadd.f32 %v2442_v1, %v1370_v52 }
 0x2fa   : > { %v2446_v34 = vpop.f32.mrb[64].mxu0 }
 0x2fb   : > { %v1375_v39 = vadd.f32 %v2365_v21, %v4124_v6  ;;  %v2366_v35 = vpop.f32.mrb[44].mxu1  ;;  %v2447_v42 = vpop.f32.mrb[65].mxu0 }
 0x2fc   : > { %v2367_v43 = vpop.f32.mrb[45].mxu1  ;;  %v2448_v44 = vadd.f32 %v2447_v42, %v2446_v34 }
 0x2fd   : > { %v2368_v45 = vadd.f32 %v2367_v43, %v2366_v35  ;;  %v4162_v46 = vadd.f32 %v2445_v7, %v1375_v39 }
 0x2fe   : > { %v2449_v51 = vpop.f32.mrb[66].mxu0 }
 0x2ff   : > { %v1380_v23 = vadd.f32 %v2368_v45, %v4126_v38  ;;  %v2369_v53 = vpop.f32.mrb[46].mxu1  ;;  %v2450_v54 = vpop.f32.mrb[67].mxu0 }
 0x300   : > { %v2370_v55 = vpop.f32.mrb[47].mxu1  ;;  %v2451_v24 = vadd.f32 %v2450_v54, %v2449_v51 }
 0x301   : > { %v2371_v59 = vadd.f32 %v2370_v55, %v2369_v53  ;;  %v4165_v61 = vadd.f32 %v2448_v44, %v1380_v23 }
 0x302   : > { %v2452_v2 = vpop.f32.mrb[68].mxu0 }
 0x303   : > { %v1385_v6 = vadd.f32 %v2371_v59, %v4128_v48  ;;  %v2372_v3 = vpop.f32.mrb[48].mxu1  ;;  %v2453_v4 = vpop.f32.mrb[69].mxu0 }
 0x304   : > { %v2373_v5 = vpop.f32.mrb[49].mxu1  ;;  %v2454_v15 = vadd.f32 %v2453_v4, %v2452_v2 }
 0x305   : > { %v2374_v16 = vadd.f32 %v2373_v5, %v2372_v3  ;;  %v4168_v17 = vadd.f32 %v2451_v24, %v1385_v6 }
 0x306   : > { %v2455_v18 = vpop.f32.mrb[70].mxu0 }
 0x307   : > { %v1390_v38 = vadd.f32 %v2374_v16, %v4130_v60  ;;  %v2375_v19 = vpop.f32.mrb[50].mxu1  ;;  %v2456_v30 = vpop.f32.mrb[71].mxu0 }
 0x308   : > { %v2376_v25 = vpop.f32.mrb[51].mxu1  ;;  %v2457_v40 = vadd.f32 %v2456_v30, %v2455_v18 }
 0x309   : > { %v2377_v13 = vadd.f32 %v2376_v25, %v2375_v19  ;;  %v4171_v14 = vadd.f32 %v2454_v15, %v1390_v38 }
 0x30a   : > { %v2458_v63 = vpop.f32.mrb[72].mxu0 }
 0x30b   : > { %v1395_v48 = vadd.f32 %v2377_v13, %v4132_v9  ;;  %v2378_v49 = vpop.f32.mrb[52].mxu1  ;;  %v2459_v0 = vpop.f32.mrb[73].mxu0 }
 0x30c   : > { %v2379_v62 = vpop.f32.mrb[53].mxu1  ;;  %v2460_v12 = vadd.f32 %v2459_v0, %v2458_v63 }
 0x30d   : > { %v2380_v22 = vadd.f32 %v2379_v62, %v2378_v49  ;;  %v4174_v32 = vadd.f32 %v2457_v40, %v1395_v48 }
 0x30e   : > { %v2461_v26 = vpop.f32.mrb[74].mxu0 }
 0x30f   : > { %v1400_v60 = vadd.f32 %v2380_v22, %v4134_v27  ;;  %v2381_v50 = vpop.f32.mrb[54].mxu1  ;;  %v2462_v1 = vpop.f32.mrb[75].mxu0 }
 0x310   : > { %v2382_v11 = vpop.f32.mrb[55].mxu1  ;;  %v2463_v37 = vadd.f32 %v2462_v1, %v2461_v26 }
 0x311   : > { %v2383_v52 = vadd.f32 %v2382_v11, %v2381_v50  ;;  %v4177_v10 = vadd.f32 %v2460_v12, %v1400_v60  ;;  %v4194_v12 = vld [vmem:[%s3714_s3] sm:$0xff]  ;;  %v4200_v50 = vld [vmem:[%s3714_s3 + $0x10] sm:$0xff] }
 0x312   : > { %v2464_v57 = vpop.f32.mrb[76].mxu0 }
 0x313   : > { %v1405_v9 = vadd.f32 %v2383_v52, %v4136_v29  ;;  %v2384_v58 = vpop.f32.mrb[56].mxu1  ;;  %v2465_v7 = vpop.f32.mrb[77].mxu0 }
 0x314   : > { %v2385_v21 = vpop.f32.mrb[57].mxu1  ;;  %v2466_v34 = vadd.f32 %v2465_v7, %v2464_v57 }
 0x315   : > { %v2386_v39 = vadd.f32 %v2385_v21, %v2384_v58  ;;  %v4180_v35 = vadd.f32 %v2463_v37, %v1405_v9 }
 0x316   : > { %v2467_v42 = vpop.f32.mrb[78].mxu0 }
 0x317   : > { %v1410_v27 = vadd.f32 %v2386_v39, %v4138_v36  ;;  %v2387_v43 = vpop.f32.mrb[58].mxu1  ;;  %v2468_v44 = vpop.f32.mrb[79].mxu0 }
 0x318   : > { %v2388_v45 = vpop.f32.mrb[59].mxu1  ;;  %v2469_v51 = vadd.f32 %v2468_v44, %v2467_v42 }
 0x319   : > { %v2389_v23 = vadd.f32 %v2388_v45, %v2387_v43  ;;  %v4183_v53 = vadd.f32 %v2466_v34, %v1410_v27 }
 0x31a   : > { %v2470_v54 = vpop.f32.mrb[80].mxu0 }
 0x31b   : > { %v1415_v29 = vadd.f32 %v2389_v23, %v4140_v56  ;;  %v2390_v55 = vpop.f32.mrb[60].mxu1  ;;  %v2471_v24 = vpop.f32.mrb[81].mxu0 }
 0x31c   : > { %v2391_v59 = vpop.f32.mrb[61].mxu1  ;;  %v2472_v2 = vadd.f32 %v2471_v24, %v2470_v54 }
 0x31d   : > { %v2392_v6 = vadd.f32 %v2391_v59, %v2390_v55  ;;  %v1560_v3 = vadd.f32 %v2469_v51, %v1415_v29 }
 0x31e   : > { %v2473_v4 = vpop.f32.mrb[82].mxu0 }
 0x31f   : > { %v1420_v5 = vadd.f32 %v2392_v6, %v4142_v20  ;;  %v2393_v36 = vpop.f32.mrb[62].mxu1  ;;  %v2474_v15 = vpop.f32.mrb[83].mxu0  ;;  %v359_v6 = vld [vmem:[%s3714_s3 + $0x40] sm:$0xff] }
 0x320   : > { %v2394_v16 = vpop.f32.mrb[63].mxu1  ;;  %v2475_v18 = vadd.f32 %v2474_v15, %v2473_v4  ;;  %v4217_v4 = vld [vmem:[%s3714_s3 + $0x60] sm:$0xff]  ;;  %v3072_v15 = vld [vmem:[%s3714_s3 + $0x8] sm:$0xff] }
 0x321   : > { %v2395_v38 = vadd.f32 %v2394_v16, %v2393_v36  ;;  %v4187_v19 = vadd.f32 %v2472_v2, %v1420_v5  ;;  %v357_v2 = vld [vmem:[%s3714_s3 + $0x30] sm:$0xff] }
 0x322   : > { %v4221_v5 = vld [vmem:[%s3714_s3 + $0x70] sm:$0xff] }
 0x323   : > { %v1425_v30 = vadd.f32 %v2395_v38, %v4144_v47  ;;  %v2636_v56 = vpop.f32.mrb[64].mxu1 }
 0x324   : > { %v1645_v25 = vadd.f32 %v2636_v56, %v4150_v28  ;;  %v1639_v40 = vpop.f32.mrb[65].mxu1 }
 0x325   : > { %v1640_v13 = vadd.f32 %v1639_v40, %v4147_v8  ;;  %v1570_v63 = vadd.f32 %v2475_v18, %v1425_v30 }
 0x326   : > { %v1719_v49 = vmax.f32 %v1645_v25, 0.0  ;;  %v3073_v25 = vld [vmem:[%s3714_s3 + $0x18] sm:$0xff] }
 0x327   : > { %v1718_v48 = vmax.f32 %v1640_v13, 0.0  ;;  %v2639_v20 = vpop.f32.mrb[66].mxu1 }
 0x328   : > { %v1655_v0 = vadd.f32 %v2639_v20, %v4156_v41  ;;  %v1649_v62 = vpop.f32.mrb[67].mxu1 }
 0x329   : > { %v1650_v22 = vadd.f32 %v1649_v62, %v4153_v31  ;;  %2690 = vmatprep.mubr.f32.mxu0 %v1718_v48 }
 0x32a   : > { %2691 = vmatmul.mubr.f32.vlgmr.msra.gmra.mrb[84].mxu0 %v1719_v49  ;;  %v1721_v28 = vmax.f32 %v1655_v0, 0.0  ;;  %v3074_v0 = vld [vmem:[%s3714_s3 + $0x28] sm:$0xff] }
 0x32b   : > { %v1720_v47 = vmax.f32 %v1650_v22, 0.0  ;;  %v2642_v26 = vpop.f32.mrb[68].mxu1  ;;  %2575 = vmatprep.mubr.f32.mxu0 %v4194_v12 }
 0x32c   : > { %v1665_v8 = vadd.f32 %v2642_v26, %v4162_v46  ;;  %v1659_v60 = vpop.f32.mrb[69].mxu1 }
 0x32d   : > { %v1660_v1 = vadd.f32 %v1659_v60, %v4159_v33  ;;  %2693 = vmatprep.mubr.f32.mxu0 %v1720_v47 }
 0x32e   : > { %2694 = vmatmul.mubr.f32.gmra.mrb[86].mxu0 %v1721_v28  ;;  %v1723_v31 = vmax.f32 %v1665_v8, 0.0  ;;  %v3075_v8 = vld [vmem:[%s3714_s3 + $0x38] sm:$0xff] }
 0x32f   : > { %v1722_v41 = vmax.f32 %v1660_v1, 0.0  ;;  %v2645_v11 = vpop.f32.mrb[70].mxu1  ;;  %2578 = vmatprep.mubr.f32.mxu0 %v4200_v50 }
 0x330   : > { %v1675_v37 = vadd.f32 %v2645_v11, %v4168_v17  ;;  %v1669_v52 = vpop.f32.mrb[71].mxu1 }
 0x331   : > { %v1670_v57 = vadd.f32 %v1669_v52, %v4165_v61  ;;  %2696 = vmatprep.mubr.f32.mxu0 %v1722_v41 }
 0x332   : > { %2697 = vmatmul.mubr.f32.gmra.mrb[88].mxu0 %v1723_v31  ;;  %v1725_v58 = vmax.f32 %v1675_v37, 0.0  ;;  %v3076_v37 = vld [vmem:[%s3714_s3 + $0x48] sm:$0xff] }
 0x333   : > { %v1724_v46 = vmax.f32 %v1670_v57, 0.0  ;;  %v2648_v9 = vpop.f32.mrb[72].mxu1 }
 0x334   : > { %v1685_v7 = vadd.f32 %v2648_v9, %v4174_v32  ;;  %v1679_v33 = vpop.f32.mrb[73].mxu1 }
 0x335   : > { %v1680_v21 = vadd.f32 %v1679_v33, %v4171_v14  ;;  %2699 = vmatprep.mubr.f32.mxu1 %v1724_v46  ;;  %v3077_v33 = vld [vmem:[%s3714_s3 + $0x58] sm:$0xff] }
 0x336   : > { %2700 = vmatmul.mubr.f32.vlgmr.msra.gmra.mrb[80].mxu1 %v1725_v58  ;;  %v1727_v42 = vmax.f32 %v1685_v7, 0.0 }
 0x337   : > { %v1726_v34 = vmax.f32 %v1680_v21, 0.0  ;;  %v2651_v39 = vpop.f32.mrb[74].mxu1 }
 0x338   : > { %v1695_v17 = vadd.f32 %v2651_v39, %v4180_v35  ;;  %v1689_v27 = vpop.f32.mrb[75].mxu1 }
 0x339   : > { %v1690_v61 = vadd.f32 %v1689_v27, %v4177_v10  ;;  %2702 = vmatprep.mubr.f32.mxu1 %v1726_v34 }
 0x33a   : > { %2703 = vmatmul.mubr.f32.gmra.mrb[82].mxu1 %v1727_v42  ;;  %v1729_v45 = vmax.f32 %v1695_v17, 0.0 }
 0x33b   : > { %v1728_v43 = vmax.f32 %v1690_v61, 0.0  ;;  %v2654_v44 = vpop.f32.mrb[76].mxu1  ;;  %v3078_v61 = vld [vmem:[%s3714_s3 + $0x68] sm:$0xff] }
 0x33c   : > { %v1705_v51 = vadd.f32 %v2654_v44, %v1560_v3  ;;  %v1699_v32 = vpop.f32.mrb[77].mxu1  ;;  %v361_v3 = vld [vmem:[%s3714_s3 + $0x50] sm:$0xff] }
 0x33d   : > { %v1700_v14 = vadd.f32 %v1699_v32, %v4183_v53  ;;  %2705 = vmatprep.mubr.f32.mxu1 %v1728_v43  ;;  %v355_v53 = vld [vmem:[%s3714_s3 + $0x20] sm:$0xff] }
 0x33e   : > { %2706 = vmatmul.mubr.f32.gmra.mrb[84].mxu1 %v1729_v45  ;;  %v1731_v35 = vmax.f32 %v1705_v51, 0.0  ;;  %2581 = vmatprep.mubr.f32.mxu0 %v355_v53 }
 0x33f   : > { %v1730_v23 = vmax.f32 %v1700_v14, 0.0  ;;  %v2657_v54 = vpop.f32.mrb[78].mxu1  ;;  %2584 = vmatprep.mubr.f32.mxu0 %v357_v2 }
 0x340   : > { %v1715_v29 = vadd.f32 %v2657_v54, %v1570_v63  ;;  %v1709_v10 = vpop.f32.mrb[79].mxu1  ;;  %2587 = vmatprep.mubr.f32.mxu0 %v359_v6 }
 0x341   : > { %v1710_v55 = vadd.f32 %v1709_v10, %v4187_v19  ;;  %2708 = vmatprep.mubr.f32.mxu1 %v1730_v23  ;;  %2590 = vmatprep.mubr.f32.mxu0 %v361_v3  ;;  %v3079_v23 = vld [vmem:[%s3714_s3 + $0x78] sm:$0xff] }
 0x342   : > { %2709 = vmatmul.mubr.f32.gmra.mrb[86].mxu1 %v1731_v35  ;;  %v1733_v59 = vmax.f32 %v1715_v29, 0.0  ;;  %2593 = vmatprep.mubr.f32.mxu0 %v4217_v4 }
 0x343   : > { %v1732_v24 = vmax.f32 %v1710_v55, 0.0  ;;  %2596 = vmatprep.mubr.f32.mxu0 %v4221_v5 }
 0x345   : > { %2711 = vmatprep.mubr.f32.mxu1 %v1732_v24 }
 0x346   : > { %2712 = vmatmul.mubr.f32.gmra.mrb[88].mxu1 %v1733_v59 }
 0x3fd   : > { %v2692_v36 = vpop.f32.mrb[84].mxu0 }
 0x3fe   : > { %v1822_v16 = vadd.f32 %v3072_v15, %v2692_v36  ;;  %v1816_v18 = vpop.f32.mrb[85].mxu0 }
 0x3ff   : > { %v1817_v38 = vadd.f32 %v1816_v18, %v4194_v12 }
 0x400   : > { %v1896_v19 = vmax.f32 %v1822_v16, 0.0 }
 0x401   : > { %v1895_v30 = vmax.f32 %v1817_v38, 0.0  ;;  %v2695_v56 = vpop.f32.mrb[86].mxu0 }
 0x402   : > { %1912 = vst [vmem:[%s4228_s26 + $0x8] sm:$0xff] %v1896_v19  ;;  %v1832_v40 = vadd.f32 %v3073_v25, %v2695_v56  ;;  %v1826_v13 = vpop.f32.mrb[87].mxu0 }
 0x403   : > { %1911 = vst [vmem:[%s4228_s26] sm:$0xff] %v1895_v30  ;;  %v1827_v63 = vadd.f32 %v1826_v13, %v4200_v50 }
 0x404   : > { %v1898_v48 = vmax.f32 %v1832_v40, 0.0 }
 0x405   : > { %v1897_v20 = vmax.f32 %v1827_v63, 0.0  ;;  %v2698_v49 = vpop.f32.mrb[88].mxu0 }
 0x406   : > { %1914 = vst [vmem:[%s4228_s26 + $0x18] sm:$0xff] %v1898_v48  ;;  %v1842_v62 = vadd.f32 %v3074_v0, %v2698_v49  ;;  %v1836_v12 = vpop.f32.mrb[89].mxu0 }
 0x407   : > { %1913 = vst [vmem:[%s4228_s26 + $0x10] sm:$0xff] %v1897_v20  ;;  %v1837_v22 = vadd.f32 %v1836_v12, %v355_v53 }
 0x408   : > { %v1900_v47 = vmax.f32 %v1842_v62, 0.0 }
 0x409   : > { %v1899_v26 = vmax.f32 %v1837_v22, 0.0  ;;  %v2701_v28 = vpop.f32.mrb[80].mxu1 }
 0x40a   : > { %1916 = vst [vmem:[%s4228_s26 + $0x28] sm:$0xff] %v1900_v47  ;;  %v1852_v60 = vadd.f32 %v3075_v8, %v2701_v28  ;;  %v1846_v50 = vpop.f32.mrb[81].mxu1 }
 0x40b   : > { %1915 = vst [vmem:[%s4228_s26 + $0x20] sm:$0xff] %v1899_v26  ;;  %v1847_v1 = vadd.f32 %v1846_v50, %v357_v2 }
 0x40c   : > { %v1902_v41 = vmax.f32 %v1852_v60, 0.0 }
 0x40d   : > { %v1901_v11 = vmax.f32 %v1847_v1, 0.0  ;;  %v2704_v31 = vpop.f32.mrb[82].mxu1 }
 0x40e   : > { %1918 = vst [vmem:[%s4228_s26 + $0x38] sm:$0xff] %v1902_v41  ;;  %v1862_v52 = vadd.f32 %v3076_v37, %v2704_v31  ;;  %v1856_v57 = vpop.f32.mrb[83].mxu1 }
 0x40f   : > { %1917 = vst [vmem:[%s4228_s26 + $0x30] sm:$0xff] %v1901_v11  ;;  %v1857_v46 = vadd.f32 %v1856_v57, %v359_v6 }
 0x410   : > { %v1904_v9 = vmax.f32 %v1862_v52, 0.0 }
 0x411   : > { %v1903_v58 = vmax.f32 %v1857_v46, 0.0  ;;  %v2707_v7 = vpop.f32.mrb[84].mxu1 }
 0x412   : > { %1920 = vst [vmem:[%s4228_s26 + $0x48] sm:$0xff] %v1904_v9  ;;  %v1872_v21 = vadd.f32 %v3077_v33, %v2707_v7  ;;  %v1866_v34 = vpop.f32.mrb[85].mxu1 }
 0x413   : > { %1919 = vst [vmem:[%s4228_s26 + $0x40] sm:$0xff] %v1903_v58  ;;  %v1867_v39 = vadd.f32 %v1866_v34, %v361_v3 }
 0x414   : > { %v1906_v42 = vmax.f32 %v1872_v21, 0.0 }
 0x415   : > { %v1905_v17 = vmax.f32 %v1867_v39, 0.0  ;;  %v2710_v27 = vpop.f32.mrb[86].mxu1 }
 0x416   : > { %1922 = vst [vmem:[%s4228_s26 + $0x58] sm:$0xff] %v1906_v42  ;;  %v1882_v43 = vadd.f32 %v3078_v61, %v2710_v27  ;;  %v1876_v44 = vpop.f32.mrb[87].mxu1 }
 0x417   : > { %1921 = vst [vmem:[%s4228_s26 + $0x50] sm:$0xff] %v1905_v17  ;;  %v1877_v45 = vadd.f32 %v1876_v44, %v4217_v4 }
 0x418   : > { %v1908_v51 = vmax.f32 %v1882_v43, 0.0 }
 0x419   : > { %v1907_v32 = vmax.f32 %v1877_v45, 0.0  ;;  %v2713_v14 = vpop.f32.mrb[88].mxu1 }
 0x41a   : > { %1924 = vst [vmem:[%s4228_s26 + $0x68] sm:$0xff] %v1908_v51  ;;  %v1892_v54 = vadd.f32 %v3079_v23, %v2713_v14  ;;  %v1886_v35 = vpop.f32.mrb[89].mxu1 }
 0x41b   : > { %1923 = vst [vmem:[%s4228_s26 + $0x60] sm:$0xff] %v1907_v32  ;;  %v1887_v29 = vadd.f32 %v1886_v35, %v4221_v5 }
 0x41c   : > { %v1910_v10 = vmax.f32 %v1892_v54, 0.0 }
 0x41d   : > { %v1909_v55 = vmax.f32 %v1887_v29, 0.0 }
 0x41e   : > { %1926 = vst [vmem:[%s4228_s26 + $0x78] sm:$0xff] %v1910_v10 }
 0x41f   : > { %1925 = vst [vmem:[%s4228_s26 + $0x70] sm:$0xff] %v1909_v55 }
 0x420   : > { %3285 = shalt.err (!%p3282_p7)
}
 0x421   : > { %s3286_s10 = scalar_lea.hbm %s4260_s18, 2048  ;;  %s3290_s0 = scalar_lea.hbm %s4369_s4, 8192 }
 0x422   : > { %p3287_p13 = scmp.ne.s32.totalorder %s4260_s18, %s3286_s10  ;;  %p3291_p11 = scmp.lt.u32.totalorder %s4260_s18, %s4369_s4 }
 0x423   : > { %p3292_p1 = scmp.lt.u32.totalorder %s3290_s0, %s3286_s10  ;;  %p3294_p8 = scmp.lt.u32.totalorder %s3286_s10, %s4260_s18 }
 0x424   : > { %p3288_p0 = pnand %p3287_p13, %p3595_p3 }
 0x425   : > { %p3293_p4 = por %p3292_p1, %p3291_p11 }
 0x426   : > { %p3289_p9 = pneg %p3288_p0 }
 0x427   : > { %p3295_p12 = por %p3294_p8, %p3293_p4 }
 0x429   : > { %p3296_p2 = pnand %p3295_p12, %p3289_p9 }
 0x42b   : > { %3299 = shalt.err (!%p3296_p2)
}
 0x42c   : > { %s3392_s12 = smov 128   ;;  %s3393_s26 = smov 8  }
 0x42d   : > { %2970 = dma.vmem_to_hbm [thread:$0]  (%p3595_p3), %s4262_s22, 2048, %s4260_s18, %s1928_s27, %s3392_s12, %s3392_s12, %s3393_s26  }
 0x42e PF: > { %s4370_s28 = sld [smem:[#allocation18_spill]]  ;;  %s4371_s11 = sld [smem:[#allocation19_spill]] }
 0x42f   : > { %p3000_p6 = scmp.ge.s32.totalorder %s3382_s25, 2 }
 0x434   : > { %s1959_s5 = sand.u32 1, %s4370_s28   ;;  %p4372_p10 = scmp.ne.s32.totalorder %s4371_s11, 0 }
 0x435   : > { %s1960_s21 = scalar_lea.sflag [#allocation5], %s1959_s5 }
 0x436   : > { %p2990_p5 = pnand %p3000_p6, %p4372_p10 }
 0x438   : > { %3349 = dma.done.wait (!%p2990_p5), %s1960_s21, 2048  }
 0x439   : > { %3351 = vsyncadd (!%p2990_p5), %s1960_s21, 4294965248  ;;  %s25_s25 = sadd.s32 1, %s3382_s25   ;;  %s4373_s15 = sld [smem:[#allocation20_spill]] }
 0x43a   : > { %p22_p7 = scmp.ge.s32.totalorder %s25_s25, 6   ;;  %s4374_s7 = sld [smem:[#allocation21_spill]] }
 0x43b   : > { %s4375_s18 = smov %s3358_s19  ;;  %s4376_s19 = smov %s3362_s20 }
 0x43c   : > { %s4377_s20 = smov %s3615_s13  ;;  %s4378_s21 = smov %s3374_s23 }
 0x43d   : > { %s4379_s22 = smov %s3378_s24  ;;  %24 = sbr.rel (!%p22_p7) target bundleno = 16 (0x10), region = 112 }
 0x43f   : > { %s4380_s23 = smov %s4373_s15 }
 0x440   : > { %s4381_s24 = smov %s4374_s7 }
 0x444   :  { %1965 = vsyncpa [#allocation4], 1 }
 0x445   :  { %1967 = vsyncpa [#allocation4 + $0x1], 1 }
 0x446   :  { %1968 = vsyncpa [#allocation7], 1 }
 0x447   :  { %1970 = vsyncpa [#allocation7 + $0x1], 1 }
 0x448   :  { %1971 = vsyncpa [#allocation10], 1 }
 0x449   :  { %1972 = vsyncpa [#allocation5], 1 }
 0x44a   :  { %1974 = vsyncpa [#allocation5 + $0x1], 1 }

</bundles_post_ra>
